<compile_context>
chip_gen: v7x
topology: tpu7x:2x2x1
jax: 0.10.0
libtpu: 0.0.40
codegen_flags: <defaults>
</compile_context>

<pallas_src>
from functools import partial

import jax
import jax.numpy as jnp
import numpy as np
from jax.experimental import pallas as pl
from jax.experimental.pallas import tpu as pltpu


def _textrnn_kernel(ids_ref, len_ref, proj0_ref,
                    whh0_ref, wih1_ref, whh1_ref, b1_ref,
                    wfc0_ref, wfc1_ref, bfc_ref,
                    out_ref, xg_ref, *, T, B, H, V, UNROLL):
    G = 4 * H

    # ---- Layer-0 input projection for ALL timesteps, off the recurrent chain.
    # One-hot gather into the precomputed [V, 4H] projection table (layer-0
    # bias already folded in).  Kept f32 so the gather is an exact selection.
    # TODO(synk): at realistic vocab sizes replace the one-hot matmul with a
    # double-buffered DMA gather from an HBM-resident table
    # (memory_space=pl.ANY + pltpu.make_async_copy) and stream time in chunks.
    ids = ids_ref[...]                                        # [T*B, 1] int32
    iota = jax.lax.broadcasted_iota(jnp.int32, (T * B, V), 1)
    onehot = (iota == ids).astype(jnp.float32)                # [T*B, V]
    xg_ref[...] = jnp.dot(onehot, proj0_ref[...],
                          preferred_element_type=jnp.float32)  # [T*B, 4H] lane-dense

    # ---- Hoisted loop-invariants (weights arrive pre-transposed, bf16).
    whh0 = whh0_ref[...]                                      # [H, 4H] bf16
    wih1 = wih1_ref[...]                                      # [H, 4H] bf16
    whh1 = whh1_ref[...]                                      # [H, 4H] bf16
    b1 = jnp.broadcast_to(b1_ref[...], (B, G))                # hoisted broadcast
    lens = len_ref[...]                                       # [B, 1] int32
    lane = jax.lax.broadcasted_iota(jnp.int32, (B, G), 1)
    g_mask = (lane >= 2 * H) & (lane < 3 * H)                 # tanh block (PyTorch i,f,g,o)

    def cell(gates, c):
        # Full-width activations over the whole [B, 4H] row, one lane select,
        # then cheap static slices of the already-activated values.
        sig = jax.nn.sigmoid(gates)
        th = jnp.tanh(gates)
        act = jnp.where(g_mask, th, sig)                      # i,f,o: sigmoid; g: tanh
        i = act[:, 0 * H:1 * H]
        f = act[:, 1 * H:2 * H]
        g = act[:, 2 * H:3 * H]
        o = act[:, 3 * H:4 * H]
        c_new = f * c + i * g
        h_new = o * jnp.tanh(c_new)
        return h_new, c_new

    def step(t, carry):
        h1, c1, h2, c2 = carry
        valid = t < lens                                      # [B, 1] packed-seq mask
        row = pl.multiple_of(t * B, B)
        # Layer 0: input projection already in xg_ref, only the serial h-matmul here.
        g0 = xg_ref[pl.ds(row, B), :] + jnp.dot(
            h1.astype(jnp.bfloat16), whh0, preferred_element_type=jnp.float32)
        h1n, c1n = cell(g0, c1)
        h1 = jnp.where(valid, h1n, h1)
        c1 = jnp.where(valid, c1n, c1)
        # TODO(synk): inter-layer LSTM dropout (p=0.1) is identity in eval mode.
        g1 = (jnp.dot(h1.astype(jnp.bfloat16), wih1, preferred_element_type=jnp.float32)
              + jnp.dot(h2.astype(jnp.bfloat16), whh1, preferred_element_type=jnp.float32)
              + b1)
        h2n, c2n = cell(g1, c2)
        h2 = jnp.where(valid, h2n, h2)
        c2 = jnp.where(valid, c2n, c2)
        return h1, c1, h2, c2

    z = jnp.zeros((B, H), jnp.float32)
    h1, c1, h2, c2 = jax.lax.fori_loop(0, T, step, (z, z, z, z), unroll=UNROLL)

    # h_n -> Dropout(identity, eval) -> transpose(0,1) -> view(B, 2H) -> Linear.
    # concat([h_l0, h_l1]) @ Wfc^T == h_l0 @ Wfc^T[:H] + h_l1 @ Wfc^T[H:].
    # Output is lane-padded to a multiple of 128 (unmasked vst); sliced outside.
    out_ref[...] = (jnp.dot(h1.astype(jnp.bfloat16), wfc0_ref[...],
                            preferred_element_type=jnp.float32)
                    + jnp.dot(h2.astype(jnp.bfloat16), wfc1_ref[...],
                              preferred_element_type=jnp.float32)
                    + bfc_ref[...])


def textrnn_forward(ids, lengths, params):
    T, B = ids.shape
    V, E = params["embedding"].shape
    H = params["w_hh_l0"].shape[1]
    O = params["w_fc"].shape[0]

    B_pad = ((B + 7) // 8) * 8          # fill sublanes / MXU rows
    O_pad = ((O + 127) // 128) * 128    # lane-dense output store

    f32 = jnp.float32
    bf16 = jnp.bfloat16

    # ---- One-time layout glue (would be cached across calls in real serving).
    # Fold the layer-0 input projection + both layer-0 biases into a per-token
    # [V, 4H] pre-activation table; pre-transpose/cast the recurrent weights.
    proj0 = (params["embedding"].astype(f32) @ params["w_ih_l0"].T.astype(f32)
             + (params["b_ih_l0"] + params["b_hh_l0"])[None, :].astype(f32))
    whh0_t = params["w_hh_l0"].T.astype(bf16)                 # [H, 4H]
    wih1_t = params["w_ih_l1"].T.astype(bf16)                 # [H, 4H]
    whh1_t = params["w_hh_l1"].T.astype(bf16)                 # [H, 4H]
    b1 = (params["b_ih_l1"] + params["b_hh_l1"]).reshape(1, 4 * H).astype(f32)
    wfc_t = params["w_fc"].T                                  # [2H, O]
    wfc0_t = jnp.zeros((H, O_pad), bf16).at[:, :O].set(wfc_t[:H].astype(bf16))
    wfc1_t = jnp.zeros((H, O_pad), bf16).at[:, :O].set(wfc_t[H:].astype(bf16))
    bfc = jnp.zeros((1, O_pad), f32).at[:, :O].set(params["b_fc"].astype(f32))

    # Pad batch (padded rows have length 0 -> state never updates, sliced away)
    # and flatten ids time-major.
    ids_p = jnp.zeros((T, B_pad), jnp.int32).at[:, :B].set(ids.astype(jnp.int32))
    len_p = jnp.zeros((B_pad, 1), jnp.int32).at[:B, 0].set(lengths.astype(jnp.int32))
    ids_flat = ids_p.reshape(T * B_pad, 1)

    args = (ids_flat, len_p, proj0, whh0_t, wih1_t, whh1_t, b1,
            wfc0_t, wfc1_t, bfc)

    scratch_bytes = T * B_pad * 4 * H * 4
    out_bytes = B_pad * O_pad * 4
    in_bytes = sum(int(a.size) * a.dtype.itemsize for a in args)
    vmem_limit = int(min(100 << 20,
                         max(32 << 20, 2 * (in_bytes + scratch_bytes + out_bytes))))

    vmem = pl.BlockSpec(memory_space=pltpu.MemorySpace.VMEM)
    kernel = partial(_textrnn_kernel, T=T, B=B_pad, H=H, V=V,
                     UNROLL=T if T <= 8 else 8)
    out = pl.pallas_call(
        kernel,
        out_shape=jax.ShapeDtypeStruct((B_pad, O_pad), f32),
        in_specs=[vmem] * len(args),
        out_specs=vmem,
        scratch_shapes=[pltpu.VMEM((T * B_pad, 4 * H), f32)],
        compiler_params=pltpu.CompilerParams(vmem_limit_bytes=vmem_limit),
    )(*args)
    # TODO(synk): for realistic T/B/V stream time in chunks (grid axis over T
    # with h/c in persistent scratch) and add a 'parallel' batch-tile grid
    # axis so v7x's two TensorCores each take half the batch.
    return out[:B, :O]


# ---------------------------------------------------------------------------
# Pure-JAX reference mirroring the PyTorch forward (packed LSTM h_n semantics)
# ---------------------------------------------------------------------------
def reference(ids, lengths, p):
    T, B = ids.shape
    H = p["w_hh_l0"].shape[1]
    x = p["embedding"][ids]                                   # [T, B, E]
    lens = lengths[:, None]                                   # [B, 1]

    def run_layer(inp, wih, whh, bih, bhh):
        h = jnp.zeros((B, H), jnp.float32)
        c = jnp.zeros((B, H), jnp.float32)
        outs = []
        for t in range(T):
            gates = inp[t] @ wih.T + bih + h @ whh.T + bhh
            i = jax.nn.sigmoid(gates[:, :H])
            f = jax.nn.sigmoid(gates[:, H:2 * H])
            g = jnp.tanh(gates[:, 2 * H:3 * H])
            o = jax.nn.sigmoid(gates[:, 3 * H:])
            c_new = f * c + i * g
            h_new = o * jnp.tanh(c_new)
            valid = t < lens
            h = jnp.where(valid, h_new, h)
            c = jnp.where(valid, c_new, c)
            outs.append(h)
        return jnp.stack(outs), h

    out1, h1 = run_layer(x, p["w_ih_l0"], p["w_hh_l0"], p["b_ih_l0"], p["b_hh_l0"])
    _, h2 = run_layer(out1, p["w_ih_l1"], p["w_hh_l1"], p["b_ih_l1"], p["b_hh_l1"])
    h_n = jnp.concatenate([h1, h2], axis=-1)                  # transpose(0,1).view(B,-1)
    return h_n @ p["w_fc"].T + p["b_fc"]


if __name__ == "__main__":
    T, B = 8, 2                       # seq_len, batch
    V, E, H, O = 64, 32, 32, 8        # vocab, embed_dim, hidden_dim, output_dim
    PAD = 0

    key = jax.random.PRNGKey(0)
    ks = jax.random.split(key, 16)

    def w(k, shape, scale=0.1):
        return jax.random.normal(k, shape, jnp.float32) * scale

    emb = w(ks[0], (V, E)).at[PAD].set(0.0)   # padding_idx row is zero
    params = {
        "embedding": emb,
        "w_ih_l0": w(ks[1], (4 * H, E)), "w_hh_l0": w(ks[2], (4 * H, H)),
        "b_ih_l0": w(ks[3], (4 * H,)),   "b_hh_l0": w(ks[4], (4 * H,)),
        "w_ih_l1": w(ks[5], (4 * H, H)), "w_hh_l1": w(ks[6], (4 * H, H)),
        "b_ih_l1": w(ks[7], (4 * H,)),   "b_hh_l1": w(ks[8], (4 * H,)),
        "w_fc": w(ks[9], (O, 2 * H)),    "b_fc": w(ks[10], (O,)),
    }

    lengths = jnp.array([8, 5], jnp.int32)    # descending (enforce_sorted=True)
    ids = jax.random.randint(ks[11], (T, B), 1, V, jnp.int32)
    t_idx = jnp.arange(T)[:, None]
    ids = jnp.where(t_idx < lengths[None, :], ids, PAD)   # pad the tails

    out = textrnn_forward(ids, lengths, params)
    out = jax.block_until_ready(out)

    ref = reference(ids, lengths, params)
    # Tolerance accounts for bf16 MXU operands on the recurrent/FC matmuls
    # (state and accumulation stay f32).
    np.testing.assert_allclose(np.asarray(out), np.asarray(ref),
                               rtol=1e-2, atol=1e-2)
    print("KERNEL_OK")
</pallas_src>

<mosaic_0001>
module attributes {stable_mosaic.version = 11 : i64} {
  func.func @_textrnn_kernel(%arg0: memref<64x1xi32, #tpu.memory_space<vmem>>, %arg1: memref<8x1xi32, #tpu.memory_space<vmem>>, %arg2: memref<64x128xf32, #tpu.memory_space<vmem>>, %arg3: memref<32x128xbf16, #tpu.memory_space<vmem>>, %arg4: memref<32x128xbf16, #tpu.memory_space<vmem>>, %arg5: memref<32x128xbf16, #tpu.memory_space<vmem>>, %arg6: memref<1x128xf32, #tpu.memory_space<vmem>>, %arg7: memref<32x128xbf16, #tpu.memory_space<vmem>>, %arg8: memref<32x128xbf16, #tpu.memory_space<vmem>>, %arg9: memref<1x128xf32, #tpu.memory_space<vmem>>, %arg10: memref<8x128xf32, #tpu.memory_space<vmem>>, %arg11: memref<64x128xf32, #tpu.memory_space<vmem>>) attributes {dimension_semantics = [], scalar_prefetch = 0 : i64, scratch_operands = 1 : i64, tpu.core_type = #tpu.core_type<tc>} {
    %c0 = arith.constant 0 : index
    %c0_0 = arith.constant 0 : index
    %0 = vector.load %arg0[%c0, %c0_0] : memref<64x1xi32, #tpu.memory_space<vmem>>, vector<64x1xi32>
    %1 = tpu.iota {dimensions = array<i32: 1>} : vector<64x64xi32>
    %2 = vector.broadcast %0 : vector<64x1xi32> to vector<64x64xi32>
    %3 = arith.cmpi eq, %1, %2 : vector<64x64xi32>
    %4 = arith.extui %3 : vector<64x64xi1> to vector<64x64xi32>
    %5 = arith.sitofp %4 : vector<64x64xi32> to vector<64x64xf32>
    %c0_1 = arith.constant 0 : index
    %c0_2 = arith.constant 0 : index
    %6 = vector.load %arg2[%c0_1, %c0_2] : memref<64x128xf32, #tpu.memory_space<vmem>>, vector<64x128xf32>
    %cst = arith.constant dense<0.000000e+00> : vector<64x128xf32>
    %7 = tpu.matmul %5, %6, %cst {dimension_numbers = #tpu.dot_dimension_numbers<[1], [0], [0], [1], [0, 0, 1, 1], [], []>} : vector<64x64xf32>, vector<64x128xf32>, vector<64x128xf32> -> vector<64x128xf32>
    %c0_3 = arith.constant 0 : index
    %c0_4 = arith.constant 0 : index
    %8 = vector.load %arg11[%c0_3, %c0_4] : memref<64x128xf32, #tpu.memory_space<vmem>>, vector<64x128xf32>
    tpu.vector_store %arg11[%c0_3, %c0_4], %7 {strides = array<i32>} : memref<64x128xf32, #tpu.memory_space<vmem>>, vector<64x128xf32>,
    %c0_5 = arith.constant 0 : index
    %c0_6 = arith.constant 0 : index
    %9 = vector.load %arg3[%c0_5, %c0_6] : memref<32x128xbf16, #tpu.memory_space<vmem>>, vector<32x128xbf16>
    %c0_7 = arith.constant 0 : index
    %c0_8 = arith.constant 0 : index
    %10 = vector.load %arg4[%c0_7, %c0_8] : memref<32x128xbf16, #tpu.memory_space<vmem>>, vector<32x128xbf16>
    %c0_9 = arith.constant 0 : index
    %c0_10 = arith.constant 0 : index
    %11 = vector.load %arg5[%c0_9, %c0_10] : memref<32x128xbf16, #tpu.memory_space<vmem>>, vector<32x128xbf16>
    %c0_11 = arith.constant 0 : index
    %c0_12 = arith.constant 0 : index
    %12 = vector.load %arg6[%c0_11, %c0_12] : memref<1x128xf32, #tpu.memory_space<vmem>>, vector<1x128xf32>
    %13 = vector.shape_cast %12 : vector<1x128xf32> to vector<1x128xf32>
    %14 = vector.broadcast %13 : vector<1x128xf32> to vector<8x128xf32>
    %c0_13 = arith.constant 0 : index
    %c0_14 = arith.constant 0 : index
    %15 = vector.load %arg1[%c0_13, %c0_14] : memref<8x1xi32, #tpu.memory_space<vmem>>, vector<8x1xi32>
    %16 = tpu.iota {dimensions = array<i32: 1>} : vector<8x128xi32>
    %c64_i32 = arith.constant 64 : i32
    %17 = vector.broadcast %c64_i32 : i32 to vector<8x128xi32>
    %18 = arith.cmpi sge, %16, %17 : vector<8x128xi32>
    %c96_i32 = arith.constant 96 : i32
    %19 = vector.broadcast %c96_i32 : i32 to vector<8x128xi32>
    %20 = arith.cmpi slt, %16, %19 : vector<8x128xi32>
    %21 = arith.andi %18, %20 : vector<8x128xi1>
    %cst_15 = arith.constant 0.000000e+00 : f32
    %22 = vector.broadcast %cst_15 : f32 to vector<8x32xf32>
    %c0_i32 = arith.constant 0 : i32
    %23 = vector.broadcast %c0_i32 : i32 to vector<8x1xi32>
    %24 = arith.cmpi slt, %23, %15 : vector<8x1xi32>
    %c8_i32 = arith.constant 8 : i32
    %25 = arith.muli %c0_i32, %c8_i32 : i32
    %26 = tpu.assume_multiple %25, 8 : i32
    %27 = arith.index_cast %26 : i32 to index
    %c0_16 = arith.constant 0 : index
    %28 = vector.load %arg11[%27, %c0_16] : memref<64x128xf32, #tpu.memory_space<vmem>>, vector<8x128xf32>
    %29 = arith.truncf %22 : vector<8x32xf32> to vector<8x32xbf16>
    %cst_17 = arith.constant dense<0.000000e+00> : vector<8x128xf32>
    %30 = tpu.matmul %29, %9, %cst_17 {dimension_numbers = #tpu.dot_dimension_numbers<[1], [0], [0], [1], [0, 0, 1, 1], [], []>} : vector<8x32xbf16>, vector<32x128xbf16>, vector<8x128xf32> -> vector<8x128xf32>
    %31 = arith.addf %28, %30 : vector<8x128xf32>
    %32 = arith.negf %31 : vector<8x128xf32>
    %33 = math.exp %32 : vector<8x128xf32>
    %cst_18 = arith.constant 1.000000e+00 : f32
    %34 = vector.broadcast %cst_18 : f32 to vector<8x128xf32>
    %35 = arith.addf %34, %33 : vector<8x128xf32>
    %36 = arith.divf %34, %35 : vector<8x128xf32>
    %37 = math.tanh %31 : vector<8x128xf32>
    %38 = arith.select %21, %37, %36 : vector<8x128xi1>, vector<8x128xf32>
    %39 = vector.extract_strided_slice %38 {offsets = [0, 0], sizes = [8, 32], strides = [1, 1]} : vector<8x128xf32> to vector<8x32xf32>
    %40 = vector.extract_strided_slice %38 {offsets = [0, 32], sizes = [8, 32], strides = [1, 1]} : vector<8x128xf32> to vector<8x32xf32>
    %41 = vector.extract_strided_slice %38 {offsets = [0, 64], sizes = [8, 32], strides = [1, 1]} : vector<8x128xf32> to vector<8x32xf32>
    %42 = vector.extract_strided_slice %38 {offsets = [0, 96], sizes = [8, 32], strides = [1, 1]} : vector<8x128xf32> to vector<8x32xf32>
    %43 = arith.mulf %40, %22 : vector<8x32xf32>
    %44 = arith.mulf %39, %41 : vector<8x32xf32>
    %45 = arith.addf %43, %44 : vector<8x32xf32>
    %46 = math.tanh %45 : vector<8x32xf32>
    %47 = arith.mulf %42, %46 : vector<8x32xf32>
    %48 = vector.shape_cast %24 : vector<8x1xi1> to vector<8x1xi1>
    %49 = vector.broadcast %48 : vector<8x1xi1> to vector<8x32xi1>
    %50 = arith.select %49, %47, %22 : vector<8x32xi1>, vector<8x32xf32>
    %51 = vector.shape_cast %24 : vector<8x1xi1> to vector<8x1xi1>
    %52 = vector.broadcast %51 : vector<8x1xi1> to vector<8x32xi1>
    %53 = arith.select %52, %45, %22 : vector<8x32xi1>, vector<8x32xf32>
    %54 = arith.truncf %50 : vector<8x32xf32> to vector<8x32xbf16>
    %cst_19 = arith.constant dense<0.000000e+00> : vector<8x128xf32>
    %55 = tpu.matmul %54, %10, %cst_19 {dimension_numbers = #tpu.dot_dimension_numbers<[1], [0], [0], [1], [0, 0, 1, 1], [], []>} : vector<8x32xbf16>, vector<32x128xbf16>, vector<8x128xf32> -> vector<8x128xf32>
    %56 = arith.truncf %22 : vector<8x32xf32> to vector<8x32xbf16>
    %cst_20 = arith.constant dense<0.000000e+00> : vector<8x128xf32>
    %57 = tpu.matmul %56, %11, %cst_20 {dimension_numbers = #tpu.dot_dimension_numbers<[1], [0], [0], [1], [0, 0, 1, 1], [], []>} : vector<8x32xbf16>, vector<32x128xbf16>, vector<8x128xf32> -> vector<8x128xf32>
    %58 = arith.addf %55, %57 : vector<8x128xf32>
    %59 = arith.addf %58, %14 : vector<8x128xf32>
    %60 = arith.negf %59 : vector<8x128xf32>
    %61 = math.exp %60 : vector<8x128xf32>
    %cst_21 = arith.constant 1.000000e+00 : f32
    %62 = vector.broadcast %cst_21 : f32 to vector<8x128xf32>
    %63 = arith.addf %62, %61 : vector<8x128xf32>
    %64 = arith.divf %62, %63 : vector<8x128xf32>
    %65 = math.tanh %59 : vector<8x128xf32>
    %66 = arith.select %21, %65, %64 : vector<8x128xi1>, vector<8x128xf32>
    %67 = vector.extract_strided_slice %66 {offsets = [0, 0], sizes = [8, 32], strides = [1, 1]} : vector<8x128xf32> to vector<8x32xf32>
    %68 = vector.extract_strided_slice %66 {offsets = [0, 32], sizes = [8, 32], strides = [1, 1]} : vector<8x128xf32> to vector<8x32xf32>
    %69 = vector.extract_strided_slice %66 {offsets = [0, 64], sizes = [8, 32], strides = [1, 1]} : vector<8x128xf32> to vector<8x32xf32>
    %70 = vector.extract_strided_slice %66 {offsets = [0, 96], sizes = [8, 32], strides = [1, 1]} : vector<8x128xf32> to vector<8x32xf32>
    %71 = arith.mulf %68, %22 : vector<8x32xf32>
    %72 = arith.mulf %67, %69 : vector<8x32xf32>
    %73 = arith.addf %71, %72 : vector<8x32xf32>
    %74 = math.tanh %73 : vector<8x32xf32>
    %75 = arith.mulf %70, %74 : vector<8x32xf32>
    %76 = vector.shape_cast %24 : vector<8x1xi1> to vector<8x1xi1>
    %77 = vector.broadcast %76 : vector<8x1xi1> to vector<8x32xi1>
    %78 = arith.select %77, %75, %22 : vector<8x32xi1>, vector<8x32xf32>
    %79 = vector.shape_cast %24 : vector<8x1xi1> to vector<8x1xi1>
    %80 = vector.broadcast %79 : vector<8x1xi1> to vector<8x32xi1>
    %81 = arith.select %80, %73, %22 : vector<8x32xi1>, vector<8x32xf32>
    %c1_i32 = arith.constant 1 : i32
    %82 = vector.broadcast %c1_i32 : i32 to vector<8x1xi32>
    %83 = arith.cmpi slt, %82, %15 : vector<8x1xi32>
    %c8_i32_22 = arith.constant 8 : i32
    %84 = arith.muli %c1_i32, %c8_i32_22 : i32
    %85 = tpu.assume_multiple %84, 8 : i32
    %86 = arith.index_cast %85 : i32 to index
    %c0_23 = arith.constant 0 : index
    %87 = vector.load %arg11[%86, %c0_23] : memref<64x128xf32, #tpu.memory_space<vmem>>, vector<8x128xf32>
    %88 = arith.truncf %50 : vector<8x32xf32> to vector<8x32xbf16>
    %cst_24 = arith.constant dense<0.000000e+00> : vector<8x128xf32>
    %89 = tpu.matmul %88, %9, %cst_24 {dimension_numbers = #tpu.dot_dimension_numbers<[1], [0], [0], [1], [0, 0, 1, 1], [], []>} : vector<8x32xbf16>, vector<32x128xbf16>, vector<8x128xf32> -> vector<8x128xf32>
    %90 = arith.addf %87, %89 : vector<8x128xf32>
    %91 = arith.negf %90 : vector<8x128xf32>
    %92 = math.exp %91 : vector<8x128xf32>
    %cst_25 = arith.constant 1.000000e+00 : f32
    %93 = vector.broadcast %cst_25 : f32 to vector<8x128xf32>
    %94 = arith.addf %93, %92 : vector<8x128xf32>
    %95 = arith.divf %93, %94 : vector<8x128xf32>
    %96 = math.tanh %90 : vector<8x128xf32>
    %97 = arith.select %21, %96, %95 : vector<8x128xi1>, vector<8x128xf32>
    %98 = vector.extract_strided_slice %97 {offsets = [0, 0], sizes = [8, 32], strides = [1, 1]} : vector<8x128xf32> to vector<8x32xf32>
    %99 = vector.extract_strided_slice %97 {offsets = [0, 32], sizes = [8, 32], strides = [1, 1]} : vector<8x128xf32> to vector<8x32xf32>
    %100 = vector.extract_strided_slice %97 {offsets = [0, 64], sizes = [8, 32], strides = [1, 1]} : vector<8x128xf32> to vector<8x32xf32>
    %101 = vector.extract_strided_slice %97 {offsets = [0, 96], sizes = [8, 32], strides = [1, 1]} : vector<8x128xf32> to vector<8x32xf32>
    %102 = arith.mulf %99, %53 : vector<8x32xf32>
    %103 = arith.mulf %98, %100 : vector<8x32xf32>
    %104 = arith.addf %102, %103 : vector<8x32xf32>
    %105 = math.tanh %104 : vector<8x32xf32>
    %106 = arith.mulf %101, %105 : vector<8x32xf32>
    %107 = vector.shape_cast %83 : vector<8x1xi1> to vector<8x1xi1>
    %108 = vector.broadcast %107 : vector<8x1xi1> to vector<8x32xi1>
    %109 = arith.select %108, %106, %50 : vector<8x32xi1>, vector<8x32xf32>
    %110 = vector.shape_cast %83 : vector<8x1xi1> to vector<8x1xi1>
    %111 = vector.broadcast %110 : vector<8x1xi1> to vector<8x32xi1>
    %112 = arith.select %111, %104, %53 : vector<8x32xi1>, vector<8x32xf32>
    %113 = arith.truncf %109 : vector<8x32xf32> to vector<8x32xbf16>
    %cst_26 = arith.constant dense<0.000000e+00> : vector<8x128xf32>
    %114 = tpu.matmul %113, %10, %cst_26 {dimension_numbers = #tpu.dot_dimension_numbers<[1], [0], [0], [1], [0, 0, 1, 1], [], []>} : vector<8x32xbf16>, vector<32x128xbf16>, vector<8x128xf32> -> vector<8x128xf32>
    %115 = arith.truncf %78 : vector<8x32xf32> to vector<8x32xbf16>
    %cst_27 = arith.constant dense<0.000000e+00> : vector<8x128xf32>
    %116 = tpu.matmul %115, %11, %cst_27 {dimension_numbers = #tpu.dot_dimension_numbers<[1], [0], [0], [1], [0, 0, 1, 1], [], []>} : vector<8x32xbf16>, vector<32x128xbf16>, vector<8x128xf32> -> vector<8x128xf32>
    %117 = arith.addf %114, %116 : vector<8x128xf32>
    %118 = arith.addf %117, %14 : vector<8x128xf32>
    %119 = arith.negf %118 : vector<8x128xf32>
    %120 = math.exp %119 : vector<8x128xf32>
    %cst_28 = arith.constant 1.000000e+00 : f32
    %121 = vector.broadcast %cst_28 : f32 to vector<8x128xf32>
    %122 = arith.addf %121, %120 : vector<8x128xf32>
    %123 = arith.divf %121, %122 : vector<8x128xf32>
    %124 = math.tanh %118 : vector<8x128xf32>
    %125 = arith.select %21, %124, %123 : vector<8x128xi1>, vector<8x128xf32>
    %126 = vector.extract_strided_slice %125 {offsets = [0, 0], sizes = [8, 32], strides = [1, 1]} : vector<8x128xf32> to vector<8x32xf32>
    %127 = vector.extract_strided_slice %125 {offsets = [0, 32], sizes = [8, 32], strides = [1, 1]} : vector<8x128xf32> to vector<8x32xf32>
    %128 = vector.extract_strided_slice %125 {offsets = [0, 64], sizes = [8, 32], strides = [1, 1]} : vector<8x128xf32> to vector<8x32xf32>
    %129 = vector.extract_strided_slice %125 {offsets = [0, 96], sizes = [8, 32], strides = [1, 1]} : vector<8x128xf32> to vector<8x32xf32>
    %130 = arith.mulf %127, %81 : vector<8x32xf32>
    %131 = arith.mulf %126, %128 : vector<8x32xf32>
    %132 = arith.addf %130, %131 : vector<8x32xf32>
    %133 = math.tanh %132 : vector<8x32xf32>
    %134 = arith.mulf %129, %133 : vector<8x32xf32>
    %135 = vector.shape_cast %83 : vector<8x1xi1> to vector<8x1xi1>
    %136 = vector.broadcast %135 : vector<8x1xi1> to vector<8x32xi1>
    %137 = arith.select %136, %134, %78 : vector<8x32xi1>, vector<8x32xf32>
    %138 = vector.shape_cast %83 : vector<8x1xi1> to vector<8x1xi1>
    %139 = vector.broadcast %138 : vector<8x1xi1> to vector<8x32xi1>
    %140 = arith.select %139, %132, %81 : vector<8x32xi1>, vector<8x32xf32>
    %c2_i32 = arith.constant 2 : i32
    %141 = vector.broadcast %c2_i32 : i32 to vector<8x1xi32>
    %142 = arith.cmpi slt, %141, %15 : vector<8x1xi32>
    %c8_i32_29 = arith.constant 8 : i32
    %143 = arith.muli %c2_i32, %c8_i32_29 : i32
    %144 = tpu.assume_multiple %143, 8 : i32
    %145 = arith.index_cast %144 : i32 to index
    %c0_30 = arith.constant 0 : index
    %146 = vector.load %arg11[%145, %c0_30] : memref<64x128xf32, #tpu.memory_space<vmem>>, vector<8x128xf32>
    %147 = arith.truncf %109 : vector<8x32xf32> to vector<8x32xbf16>
    %cst_31 = arith.constant dense<0.000000e+00> : vector<8x128xf32>
    %148 = tpu.matmul %147, %9, %cst_31 {dimension_numbers = #tpu.dot_dimension_numbers<[1], [0], [0], [1], [0, 0, 1, 1], [], []>} : vector<8x32xbf16>, vector<32x128xbf16>, vector<8x128xf32> -> vector<8x128xf32>
    %149 = arith.addf %146, %148 : vector<8x128xf32>
    %150 = arith.negf %149 : vector<8x128xf32>
    %151 = math.exp %150 : vector<8x128xf32>
    %cst_32 = arith.constant 1.000000e+00 : f32
    %152 = vector.broadcast %cst_32 : f32 to vector<8x128xf32>
    %153 = arith.addf %152, %151 : vector<8x128xf32>
    %154 = arith.divf %152, %153 : vector<8x128xf32>
    %155 = math.tanh %149 : vector<8x128xf32>
    %156 = arith.select %21, %155, %154 : vector<8x128xi1>, vector<8x128xf32>
    %157 = vector.extract_strided_slice %156 {offsets = [0, 0], sizes = [8, 32], strides = [1, 1]} : vector<8x128xf32> to vector<8x32xf32>
    %158 = vector.extract_strided_slice %156 {offsets = [0, 32], sizes = [8, 32], strides = [1, 1]} : vector<8x128xf32> to vector<8x32xf32>
    %159 = vector.extract_strided_slice %156 {offsets = [0, 64], sizes = [8, 32], strides = [1, 1]} : vector<8x128xf32> to vector<8x32xf32>
    %160 = vector.extract_strided_slice %156 {offsets = [0, 96], sizes = [8, 32], strides = [1, 1]} : vector<8x128xf32> to vector<8x32xf32>
    %161 = arith.mulf %158, %112 : vector<8x32xf32>
    %162 = arith.mulf %157, %159 : vector<8x32xf32>
    %163 = arith.addf %161, %162 : vector<8x32xf32>
    %164 = math.tanh %163 : vector<8x32xf32>
    %165 = arith.mulf %160, %164 : vector<8x32xf32>
    %166 = vector.shape_cast %142 : vector<8x1xi1> to vector<8x1xi1>
    %167 = vector.broadcast %166 : vector<8x1xi1> to vector<8x32xi1>
    %168 = arith.select %167, %165, %109 : vector<8x32xi1>, vector<8x32xf32>
    %169 = vector.shape_cast %142 : vector<8x1xi1> to vector<8x1xi1>
    %170 = vector.broadcast %169 : vector<8x1xi1> to vector<8x32xi1>
    %171 = arith.select %170, %163, %112 : vector<8x32xi1>, vector<8x32xf32>
    %172 = arith.truncf %168 : vector<8x32xf32> to vector<8x32xbf16>
    %cst_33 = arith.constant dense<0.000000e+00> : vector<8x128xf32>
    %173 = tpu.matmul %172, %10, %cst_33 {dimension_numbers = #tpu.dot_dimension_numbers<[1], [0], [0], [1], [0, 0, 1, 1], [], []>} : vector<8x32xbf16>, vector<32x128xbf16>, vector<8x128xf32> -> vector<8x128xf32>
    %174 = arith.truncf %137 : vector<8x32xf32> to vector<8x32xbf16>
    %cst_34 = arith.constant dense<0.000000e+00> : vector<8x128xf32>
    %175 = tpu.matmul %174, %11, %cst_34 {dimension_numbers = #tpu.dot_dimension_numbers<[1], [0], [0], [1], [0, 0, 1, 1], [], []>} : vector<8x32xbf16>, vector<32x128xbf16>, vector<8x128xf32> -> vector<8x128xf32>
    %176 = arith.addf %173, %175 : vector<8x128xf32>
    %177 = arith.addf %176, %14 : vector<8x128xf32>
    %178 = arith.negf %177 : vector<8x128xf32>
    %179 = math.exp %178 : vector<8x128xf32>
    %cst_35 = arith.constant 1.000000e+00 : f32
    %180 = vector.broadcast %cst_35 : f32 to vector<8x128xf32>
    %181 = arith.addf %180, %179 : vector<8x128xf32>
    %182 = arith.divf %180, %181 : vector<8x128xf32>
    %183 = math.tanh %177 : vector<8x128xf32>
    %184 = arith.select %21, %183, %182 : vector<8x128xi1>, vector<8x128xf32>
    %185 = vector.extract_strided_slice %184 {offsets = [0, 0], sizes = [8, 32], strides = [1, 1]} : vector<8x128xf32> to vector<8x32xf32>
    %186 = vector.extract_strided_slice %184 {offsets = [0, 32], sizes = [8, 32], strides = [1, 1]} : vector<8x128xf32> to vector<8x32xf32>
    %187 = vector.extract_strided_slice %184 {offsets = [0, 64], sizes = [8, 32], strides = [1, 1]} : vector<8x128xf32> to vector<8x32xf32>
    %188 = vector.extract_strided_slice %184 {offsets = [0, 96], sizes = [8, 32], strides = [1, 1]} : vector<8x128xf32> to vector<8x32xf32>
    %189 = arith.mulf %186, %140 : vector<8x32xf32>
    %190 = arith.mulf %185, %187 : vector<8x32xf32>
    %191 = arith.addf %189, %190 : vector<8x32xf32>
    %192 = math.tanh %191 : vector<8x32xf32>
    %193 = arith.mulf %188, %192 : vector<8x32xf32>
    %194 = vector.shape_cast %142 : vector<8x1xi1> to vector<8x1xi1>
    %195 = vector.broadcast %194 : vector<8x1xi1> to vector<8x32xi1>
    %196 = arith.select %195, %193, %137 : vector<8x32xi1>, vector<8x32xf32>
    %197 = vector.shape_cast %142 : vector<8x1xi1> to vector<8x1xi1>
    %198 = vector.broadcast %197 : vector<8x1xi1> to vector<8x32xi1>
    %199 = arith.select %198, %191, %140 : vector<8x32xi1>, vector<8x32xf32>
    %c3_i32 = arith.constant 3 : i32
    %200 = vector.broadcast %c3_i32 : i32 to vector<8x1xi32>
    %201 = arith.cmpi slt, %200, %15 : vector<8x1xi32>
    %c8_i32_36 = arith.constant 8 : i32
    %202 = arith.muli %c3_i32, %c8_i32_36 : i32
    %203 = tpu.assume_multiple %202, 8 : i32
    %204 = arith.index_cast %203 : i32 to index
    %c0_37 = arith.constant 0 : index
    %205 = vector.load %arg11[%204, %c0_37] : memref<64x128xf32, #tpu.memory_space<vmem>>, vector<8x128xf32>
    %206 = arith.truncf %168 : vector<8x32xf32> to vector<8x32xbf16>
    %cst_38 = arith.constant dense<0.000000e+00> : vector<8x128xf32>
    %207 = tpu.matmul %206, %9, %cst_38 {dimension_numbers = #tpu.dot_dimension_numbers<[1], [0], [0], [1], [0, 0, 1, 1], [], []>} : vector<8x32xbf16>, vector<32x128xbf16>, vector<8x128xf32> -> vector<8x128xf32>
    %208 = arith.addf %205, %207 : vector<8x128xf32>
    %209 = arith.negf %208 : vector<8x128xf32>
    %210 = math.exp %209 : vector<8x128xf32>
    %cst_39 = arith.constant 1.000000e+00 : f32
    %211 = vector.broadcast %cst_39 : f32 to vector<8x128xf32>
    %212 = arith.addf %211, %210 : vector<8x128xf32>
    %213 = arith.divf %211, %212 : vector<8x128xf32>
    %214 = math.tanh %208 : vector<8x128xf32>
    %215 = arith.select %21, %214, %213 : vector<8x128xi1>, vector<8x128xf32>
    %216 = vector.extract_strided_slice %215 {offsets = [0, 0], sizes = [8, 32], strides = [1, 1]} : vector<8x128xf32> to vector<8x32xf32>
    %217 = vector.extract_strided_slice %215 {offsets = [0, 32], sizes = [8, 32], strides = [1, 1]} : vector<8x128xf32> to vector<8x32xf32>
    %218 = vector.extract_strided_slice %215 {offsets = [0, 64], sizes = [8, 32], strides = [1, 1]} : vector<8x128xf32> to vector<8x32xf32>
    %219 = vector.extract_strided_slice %215 {offsets = [0, 96], sizes = [8, 32], strides = [1, 1]} : vector<8x128xf32> to vector<8x32xf32>
    %220 = arith.mulf %217, %171 : vector<8x32xf32>
    %221 = arith.mulf %216, %218 : vector<8x32xf32>
    %222 = arith.addf %220, %221 : vector<8x32xf32>
    %223 = math.tanh %222 : vector<8x32xf32>
    %224 = arith.mulf %219, %223 : vector<8x32xf32>
    %225 = vector.shape_cast %201 : vector<8x1xi1> to vector<8x1xi1>
    %226 = vector.broadcast %225 : vector<8x1xi1> to vector<8x32xi1>
    %227 = arith.select %226, %224, %168 : vector<8x32xi1>, vector<8x32xf32>
    %228 = vector.shape_cast %201 : vector<8x1xi1> to vector<8x1xi1>
    %229 = vector.broadcast %228 : vector<8x1xi1> to vector<8x32xi1>
    %230 = arith.select %229, %222, %171 : vector<8x32xi1>, vector<8x32xf32>
    %231 = arith.truncf %227 : vector<8x32xf32> to vector<8x32xbf16>
    %cst_40 = arith.constant dense<0.000000e+00> : vector<8x128xf32>
    %232 = tpu.matmul %231, %10, %cst_40 {dimension_numbers = #tpu.dot_dimension_numbers<[1], [0], [0], [1], [0, 0, 1, 1], [], []>} : vector<8x32xbf16>, vector<32x128xbf16>, vector<8x128xf32> -> vector<8x128xf32>
    %233 = arith.truncf %196 : vector<8x32xf32> to vector<8x32xbf16>
    %cst_41 = arith.constant dense<0.000000e+00> : vector<8x128xf32>
    %234 = tpu.matmul %233, %11, %cst_41 {dimension_numbers = #tpu.dot_dimension_numbers<[1], [0], [0], [1], [0, 0, 1, 1], [], []>} : vector<8x32xbf16>, vector<32x128xbf16>, vector<8x128xf32> -> vector<8x128xf32>
    %235 = arith.addf %232, %234 : vector<8x128xf32>
    %236 = arith.addf %235, %14 : vector<8x128xf32>
    %237 = arith.negf %236 : vector<8x128xf32>
    %238 = math.exp %237 : vector<8x128xf32>
    %cst_42 = arith.constant 1.000000e+00 : f32
    %239 = vector.broadcast %cst_42 : f32 to vector<8x128xf32>
    %240 = arith.addf %239, %238 : vector<8x128xf32>
    %241 = arith.divf %239, %240 : vector<8x128xf32>
    %242 = math.tanh %236 : vector<8x128xf32>
    %243 = arith.select %21, %242, %241 : vector<8x128xi1>, vector<8x128xf32>
    %244 = vector.extract_strided_slice %243 {offsets = [0, 0], sizes = [8, 32], strides = [1, 1]} : vector<8x128xf32> to vector<8x32xf32>
    %245 = vector.extract_strided_slice %243 {offsets = [0, 32], sizes = [8, 32], strides = [1, 1]} : vector<8x128xf32> to vector<8x32xf32>
    %246 = vector.extract_strided_slice %243 {offsets = [0, 64], sizes = [8, 32], strides = [1, 1]} : vector<8x128xf32> to vector<8x32xf32>
    %247 = vector.extract_strided_slice %243 {offsets = [0, 96], sizes = [8, 32], strides = [1, 1]} : vector<8x128xf32> to vector<8x32xf32>
    %248 = arith.mulf %245, %199 : vector<8x32xf32>
    %249 = arith.mulf %244, %246 : vector<8x32xf32>
    %250 = arith.addf %248, %249 : vector<8x32xf32>
    %251 = math.tanh %250 : vector<8x32xf32>
    %252 = arith.mulf %247, %251 : vector<8x32xf32>
    %253 = vector.shape_cast %201 : vector<8x1xi1> to vector<8x1xi1>
    %254 = vector.broadcast %253 : vector<8x1xi1> to vector<8x32xi1>
    %255 = arith.select %254, %252, %196 : vector<8x32xi1>, vector<8x32xf32>
    %256 = vector.shape_cast %201 : vector<8x1xi1> to vector<8x1xi1>
    %257 = vector.broadcast %256 : vector<8x1xi1> to vector<8x32xi1>
    %258 = arith.select %257, %250, %199 : vector<8x32xi1>, vector<8x32xf32>
    %c4_i32 = arith.constant 4 : i32
    %259 = vector.broadcast %c4_i32 : i32 to vector<8x1xi32>
    %260 = arith.cmpi slt, %259, %15 : vector<8x1xi32>
    %c8_i32_43 = arith.constant 8 : i32
    %261 = arith.muli %c4_i32, %c8_i32_43 : i32
    %262 = tpu.assume_multiple %261, 8 : i32
    %263 = arith.index_cast %262 : i32 to index
    %c0_44 = arith.constant 0 : index
    %264 = vector.load %arg11[%263, %c0_44] : memref<64x128xf32, #tpu.memory_space<vmem>>, vector<8x128xf32>
    %265 = arith.truncf %227 : vector<8x32xf32> to vector<8x32xbf16>
    %cst_45 = arith.constant dense<0.000000e+00> : vector<8x128xf32>
    %266 = tpu.matmul %265, %9, %cst_45 {dimension_numbers = #tpu.dot_dimension_numbers<[1], [0], [0], [1], [0, 0, 1, 1], [], []>} : vector<8x32xbf16>, vector<32x128xbf16>, vector<8x128xf32> -> vector<8x128xf32>
    %267 = arith.addf %264, %266 : vector<8x128xf32>
    %268 = arith.negf %267 : vector<8x128xf32>
    %269 = math.exp %268 : vector<8x128xf32>
    %cst_46 = arith.constant 1.000000e+00 : f32
    %270 = vector.broadcast %cst_46 : f32 to vector<8x128xf32>
    %271 = arith.addf %270, %269 : vector<8x128xf32>
    %272 = arith.divf %270, %271 : vector<8x128xf32>
    %273 = math.tanh %267 : vector<8x128xf32>
    %274 = arith.select %21, %273, %272 : vector<8x128xi1>, vector<8x128xf32>
    %275 = vector.extract_strided_slice %274 {offsets = [0, 0], sizes = [8, 32], strides = [1, 1]} : vector<8x128xf32> to vector<8x32xf32>
    %276 = vector.extract_strided_slice %274 {offsets = [0, 32], sizes = [8, 32], strides = [1, 1]} : vector<8x128xf32> to vector<8x32xf32>
    %277 = vector.extract_strided_slice %274 {offsets = [0, 64], sizes = [8, 32], strides = [1, 1]} : vector<8x128xf32> to vector<8x32xf32>
    %278 = vector.extract_strided_slice %274 {offsets = [0, 96], sizes = [8, 32], strides = [1, 1]} : vector<8x128xf32> to vector<8x32xf32>
    %279 = arith.mulf %276, %230 : vector<8x32xf32>
    %280 = arith.mulf %275, %277 : vector<8x32xf32>
    %281 = arith.addf %279, %280 : vector<8x32xf32>
    %282 = math.tanh %281 : vector<8x32xf32>
    %283 = arith.mulf %278, %282 : vector<8x32xf32>
    %284 = vector.shape_cast %260 : vector<8x1xi1> to vector<8x1xi1>
    %285 = vector.broadcast %284 : vector<8x1xi1> to vector<8x32xi1>
    %286 = arith.select %285, %283, %227 : vector<8x32xi1>, vector<8x32xf32>
    %287 = vector.shape_cast %260 : vector<8x1xi1> to vector<8x1xi1>
    %288 = vector.broadcast %287 : vector<8x1xi1> to vector<8x32xi1>
    %289 = arith.select %288, %281, %230 : vector<8x32xi1>, vector<8x32xf32>
    %290 = arith.truncf %286 : vector<8x32xf32> to vector<8x32xbf16>
    %cst_47 = arith.constant dense<0.000000e+00> : vector<8x128xf32>
    %291 = tpu.matmul %290, %10, %cst_47 {dimension_numbers = #tpu.dot_dimension_numbers<[1], [0], [0], [1], [0, 0, 1, 1], [], []>} : vector<8x32xbf16>, vector<32x128xbf16>, vector<8x128xf32> -> vector<8x128xf32>
    %292 = arith.truncf %255 : vector<8x32xf32> to vector<8x32xbf16>
    %cst_48 = arith.constant dense<0.000000e+00> : vector<8x128xf32>
    %293 = tpu.matmul %292, %11, %cst_48 {dimension_numbers = #tpu.dot_dimension_numbers<[1], [0], [0], [1], [0, 0, 1, 1], [], []>} : vector<8x32xbf16>, vector<32x128xbf16>, vector<8x128xf32> -> vector<8x128xf32>
    %294 = arith.addf %291, %293 : vector<8x128xf32>
    %295 = arith.addf %294, %14 : vector<8x128xf32>
    %296 = arith.negf %295 : vector<8x128xf32>
    %297 = math.exp %296 : vector<8x128xf32>
    %cst_49 = arith.constant 1.000000e+00 : f32
    %298 = vector.broadcast %cst_49 : f32 to vector<8x128xf32>
    %299 = arith.addf %298, %297 : vector<8x128xf32>
    %300 = arith.divf %298, %299 : vector<8x128xf32>
    %301 = math.tanh %295 : vector<8x128xf32>
    %302 = arith.select %21, %301, %300 : vector<8x128xi1>, vector<8x128xf32>
    %303 = vector.extract_strided_slice %302 {offsets = [0, 0], sizes = [8, 32], strides = [1, 1]} : vector<8x128xf32> to vector<8x32xf32>
    %304 = vector.extract_strided_slice %302 {offsets = [0, 32], sizes = [8, 32], strides = [1, 1]} : vector<8x128xf32> to vector<8x32xf32>
    %305 = vector.extract_strided_slice %302 {offsets = [0, 64], sizes = [8, 32], strides = [1, 1]} : vector<8x128xf32> to vector<8x32xf32>
    %306 = vector.extract_strided_slice %302 {offsets = [0, 96], sizes = [8, 32], strides = [1, 1]} : vector<8x128xf32> to vector<8x32xf32>
    %307 = arith.mulf %304, %258 : vector<8x32xf32>
    %308 = arith.mulf %303, %305 : vector<8x32xf32>
    %309 = arith.addf %307, %308 : vector<8x32xf32>
    %310 = math.tanh %309 : vector<8x32xf32>
    %311 = arith.mulf %306, %310 : vector<8x32xf32>
    %312 = vector.shape_cast %260 : vector<8x1xi1> to vector<8x1xi1>
    %313 = vector.broadcast %312 : vector<8x1xi1> to vector<8x32xi1>
    %314 = arith.select %313, %311, %255 : vector<8x32xi1>, vector<8x32xf32>
    %315 = vector.shape_cast %260 : vector<8x1xi1> to vector<8x1xi1>
    %316 = vector.broadcast %315 : vector<8x1xi1> to vector<8x32xi1>
    %317 = arith.select %316, %309, %258 : vector<8x32xi1>, vector<8x32xf32>
    %c5_i32 = arith.constant 5 : i32
    %318 = vector.broadcast %c5_i32 : i32 to vector<8x1xi32>
    %319 = arith.cmpi slt, %318, %15 : vector<8x1xi32>
    %c8_i32_50 = arith.constant 8 : i32
    %320 = arith.muli %c5_i32, %c8_i32_50 : i32
    %321 = tpu.assume_multiple %320, 8 : i32
    %322 = arith.index_cast %321 : i32 to index
    %c0_51 = arith.constant 0 : index
    %323 = vector.load %arg11[%322, %c0_51] : memref<64x128xf32, #tpu.memory_space<vmem>>, vector<8x128xf32>
    %324 = arith.truncf %286 : vector<8x32xf32> to vector<8x32xbf16>
    %cst_52 = arith.constant dense<0.000000e+00> : vector<8x128xf32>
    %325 = tpu.matmul %324, %9, %cst_52 {dimension_numbers = #tpu.dot_dimension_numbers<[1], [0], [0], [1], [0, 0, 1, 1], [], []>} : vector<8x32xbf16>, vector<32x128xbf16>, vector<8x128xf32> -> vector<8x128xf32>
    %326 = arith.addf %323, %325 : vector<8x128xf32>
    %327 = arith.negf %326 : vector<8x128xf32>
    %328 = math.exp %327 : vector<8x128xf32>
    %cst_53 = arith.constant 1.000000e+00 : f32
    %329 = vector.broadcast %cst_53 : f32 to vector<8x128xf32>
    %330 = arith.addf %329, %328 : vector<8x128xf32>
    %331 = arith.divf %329, %330 : vector<8x128xf32>
    %332 = math.tanh %326 : vector<8x128xf32>
    %333 = arith.select %21, %332, %331 : vector<8x128xi1>, vector<8x128xf32>
    %334 = vector.extract_strided_slice %333 {offsets = [0, 0], sizes = [8, 32], strides = [1, 1]} : vector<8x128xf32> to vector<8x32xf32>
    %335 = vector.extract_strided_slice %333 {offsets = [0, 32], sizes = [8, 32], strides = [1, 1]} : vector<8x128xf32> to vector<8x32xf32>
    %336 = vector.extract_strided_slice %333 {offsets = [0, 64], sizes = [8, 32], strides = [1, 1]} : vector<8x128xf32> to vector<8x32xf32>
    %337 = vector.extract_strided_slice %333 {offsets = [0, 96], sizes = [8, 32], strides = [1, 1]} : vector<8x128xf32> to vector<8x32xf32>
    %338 = arith.mulf %335, %289 : vector<8x32xf32>
    %339 = arith.mulf %334, %336 : vector<8x32xf32>
    %340 = arith.addf %338, %339 : vector<8x32xf32>
    %341 = math.tanh %340 : vector<8x32xf32>
    %342 = arith.mulf %337, %341 : vector<8x32xf32>
    %343 = vector.shape_cast %319 : vector<8x1xi1> to vector<8x1xi1>
    %344 = vector.broadcast %343 : vector<8x1xi1> to vector<8x32xi1>
    %345 = arith.select %344, %342, %286 : vector<8x32xi1>, vector<8x32xf32>
    %346 = vector.shape_cast %319 : vector<8x1xi1> to vector<8x1xi1>
    %347 = vector.broadcast %346 : vector<8x1xi1> to vector<8x32xi1>
    %348 = arith.select %347, %340, %289 : vector<8x32xi1>, vector<8x32xf32>
    %349 = arith.truncf %345 : vector<8x32xf32> to vector<8x32xbf16>
    %cst_54 = arith.constant dense<0.000000e+00> : vector<8x128xf32>
    %350 = tpu.matmul %349, %10, %cst_54 {dimension_numbers = #tpu.dot_dimension_numbers<[1], [0], [0], [1], [0, 0, 1, 1], [], []>} : vector<8x32xbf16>, vector<32x128xbf16>, vector<8x128xf32> -> vector<8x128xf32>
    %351 = arith.truncf %314 : vector<8x32xf32> to vector<8x32xbf16>
    %cst_55 = arith.constant dense<0.000000e+00> : vector<8x128xf32>
    %352 = tpu.matmul %351, %11, %cst_55 {dimension_numbers = #tpu.dot_dimension_numbers<[1], [0], [0], [1], [0, 0, 1, 1], [], []>} : vector<8x32xbf16>, vector<32x128xbf16>, vector<8x128xf32> -> vector<8x128xf32>
    %353 = arith.addf %350, %352 : vector<8x128xf32>
    %354 = arith.addf %353, %14 : vector<8x128xf32>
    %355 = arith.negf %354 : vector<8x128xf32>
    %356 = math.exp %355 : vector<8x128xf32>
    %cst_56 = arith.constant 1.000000e+00 : f32
    %357 = vector.broadcast %cst_56 : f32 to vector<8x128xf32>
    %358 = arith.addf %357, %356 : vector<8x128xf32>
    %359 = arith.divf %357, %358 : vector<8x128xf32>
    %360 = math.tanh %354 : vector<8x128xf32>
    %361 = arith.select %21, %360, %359 : vector<8x128xi1>, vector<8x128xf32>
    %362 = vector.extract_strided_slice %361 {offsets = [0, 0], sizes = [8, 32], strides = [1, 1]} : vector<8x128xf32> to vector<8x32xf32>
    %363 = vector.extract_strided_slice %361 {offsets = [0, 32], sizes = [8, 32], strides = [1, 1]} : vector<8x128xf32> to vector<8x32xf32>
    %364 = vector.extract_strided_slice %361 {offsets = [0, 64], sizes = [8, 32], strides = [1, 1]} : vector<8x128xf32> to vector<8x32xf32>
    %365 = vector.extract_strided_slice %361 {offsets = [0, 96], sizes = [8, 32], strides = [1, 1]} : vector<8x128xf32> to vector<8x32xf32>
    %366 = arith.mulf %363, %317 : vector<8x32xf32>
    %367 = arith.mulf %362, %364 : vector<8x32xf32>
    %368 = arith.addf %366, %367 : vector<8x32xf32>
    %369 = math.tanh %368 : vector<8x32xf32>
    %370 = arith.mulf %365, %369 : vector<8x32xf32>
    %371 = vector.shape_cast %319 : vector<8x1xi1> to vector<8x1xi1>
    %372 = vector.broadcast %371 : vector<8x1xi1> to vector<8x32xi1>
    %373 = arith.select %372, %370, %314 : vector<8x32xi1>, vector<8x32xf32>
    %374 = vector.shape_cast %319 : vector<8x1xi1> to vector<8x1xi1>
    %375 = vector.broadcast %374 : vector<8x1xi1> to vector<8x32xi1>
    %376 = arith.select %375, %368, %317 : vector<8x32xi1>, vector<8x32xf32>
    %c6_i32 = arith.constant 6 : i32
    %377 = vector.broadcast %c6_i32 : i32 to vector<8x1xi32>
    %378 = arith.cmpi slt, %377, %15 : vector<8x1xi32>
    %c8_i32_57 = arith.constant 8 : i32
    %379 = arith.muli %c6_i32, %c8_i32_57 : i32
    %380 = tpu.assume_multiple %379, 8 : i32
    %381 = arith.index_cast %380 : i32 to index
    %c0_58 = arith.constant 0 : index
    %382 = vector.load %arg11[%381, %c0_58] : memref<64x128xf32, #tpu.memory_space<vmem>>, vector<8x128xf32>
    %383 = arith.truncf %345 : vector<8x32xf32> to vector<8x32xbf16>
    %cst_59 = arith.constant dense<0.000000e+00> : vector<8x128xf32>
    %384 = tpu.matmul %383, %9, %cst_59 {dimension_numbers = #tpu.dot_dimension_numbers<[1], [0], [0], [1], [0, 0, 1, 1], [], []>} : vector<8x32xbf16>, vector<32x128xbf16>, vector<8x128xf32> -> vector<8x128xf32>
    %385 = arith.addf %382, %384 : vector<8x128xf32>
    %386 = arith.negf %385 : vector<8x128xf32>
    %387 = math.exp %386 : vector<8x128xf32>
    %cst_60 = arith.constant 1.000000e+00 : f32
    %388 = vector.broadcast %cst_60 : f32 to vector<8x128xf32>
    %389 = arith.addf %388, %387 : vector<8x128xf32>
    %390 = arith.divf %388, %389 : vector<8x128xf32>
    %391 = math.tanh %385 : vector<8x128xf32>
    %392 = arith.select %21, %391, %390 : vector<8x128xi1>, vector<8x128xf32>
    %393 = vector.extract_strided_slice %392 {offsets = [0, 0], sizes = [8, 32], strides = [1, 1]} : vector<8x128xf32> to vector<8x32xf32>
    %394 = vector.extract_strided_slice %392 {offsets = [0, 32], sizes = [8, 32], strides = [1, 1]} : vector<8x128xf32> to vector<8x32xf32>
    %395 = vector.extract_strided_slice %392 {offsets = [0, 64], sizes = [8, 32], strides = [1, 1]} : vector<8x128xf32> to vector<8x32xf32>
    %396 = vector.extract_strided_slice %392 {offsets = [0, 96], sizes = [8, 32], strides = [1, 1]} : vector<8x128xf32> to vector<8x32xf32>
    %397 = arith.mulf %394, %348 : vector<8x32xf32>
    %398 = arith.mulf %393, %395 : vector<8x32xf32>
    %399 = arith.addf %397, %398 : vector<8x32xf32>
    %400 = math.tanh %399 : vector<8x32xf32>
    %401 = arith.mulf %396, %400 : vector<8x32xf32>
    %402 = vector.shape_cast %378 : vector<8x1xi1> to vector<8x1xi1>
    %403 = vector.broadcast %402 : vector<8x1xi1> to vector<8x32xi1>
    %404 = arith.select %403, %401, %345 : vector<8x32xi1>, vector<8x32xf32>
    %405 = vector.shape_cast %378 : vector<8x1xi1> to vector<8x1xi1>
    %406 = vector.broadcast %405 : vector<8x1xi1> to vector<8x32xi1>
    %407 = arith.select %406, %399, %348 : vector<8x32xi1>, vector<8x32xf32>
    %408 = arith.truncf %404 : vector<8x32xf32> to vector<8x32xbf16>
    %cst_61 = arith.constant dense<0.000000e+00> : vector<8x128xf32>
    %409 = tpu.matmul %408, %10, %cst_61 {dimension_numbers = #tpu.dot_dimension_numbers<[1], [0], [0], [1], [0, 0, 1, 1], [], []>} : vector<8x32xbf16>, vector<32x128xbf16>, vector<8x128xf32> -> vector<8x128xf32>
    %410 = arith.truncf %373 : vector<8x32xf32> to vector<8x32xbf16>
    %cst_62 = arith.constant dense<0.000000e+00> : vector<8x128xf32>
    %411 = tpu.matmul %410, %11, %cst_62 {dimension_numbers = #tpu.dot_dimension_numbers<[1], [0], [0], [1], [0, 0, 1, 1], [], []>} : vector<8x32xbf16>, vector<32x128xbf16>, vector<8x128xf32> -> vector<8x128xf32>
    %412 = arith.addf %409, %411 : vector<8x128xf32>
    %413 = arith.addf %412, %14 : vector<8x128xf32>
    %414 = arith.negf %413 : vector<8x128xf32>
    %415 = math.exp %414 : vector<8x128xf32>
    %cst_63 = arith.constant 1.000000e+00 : f32
    %416 = vector.broadcast %cst_63 : f32 to vector<8x128xf32>
    %417 = arith.addf %416, %415 : vector<8x128xf32>
    %418 = arith.divf %416, %417 : vector<8x128xf32>
    %419 = math.tanh %413 : vector<8x128xf32>
    %420 = arith.select %21, %419, %418 : vector<8x128xi1>, vector<8x128xf32>
    %421 = vector.extract_strided_slice %420 {offsets = [0, 0], sizes = [8, 32], strides = [1, 1]} : vector<8x128xf32> to vector<8x32xf32>
    %422 = vector.extract_strided_slice %420 {offsets = [0, 32], sizes = [8, 32], strides = [1, 1]} : vector<8x128xf32> to vector<8x32xf32>
    %423 = vector.extract_strided_slice %420 {offsets = [0, 64], sizes = [8, 32], strides = [1, 1]} : vector<8x128xf32> to vector<8x32xf32>
    %424 = vector.extract_strided_slice %420 {offsets = [0, 96], sizes = [8, 32], strides = [1, 1]} : vector<8x128xf32> to vector<8x32xf32>
    %425 = arith.mulf %422, %376 : vector<8x32xf32>
    %426 = arith.mulf %421, %423 : vector<8x32xf32>
    %427 = arith.addf %425, %426 : vector<8x32xf32>
    %428 = math.tanh %427 : vector<8x32xf32>
    %429 = arith.mulf %424, %428 : vector<8x32xf32>
    %430 = vector.shape_cast %378 : vector<8x1xi1> to vector<8x1xi1>
    %431 = vector.broadcast %430 : vector<8x1xi1> to vector<8x32xi1>
    %432 = arith.select %431, %429, %373 : vector<8x32xi1>, vector<8x32xf32>
    %433 = vector.shape_cast %378 : vector<8x1xi1> to vector<8x1xi1>
    %434 = vector.broadcast %433 : vector<8x1xi1> to vector<8x32xi1>
    %435 = arith.select %434, %427, %376 : vector<8x32xi1>, vector<8x32xf32>
    %c7_i32 = arith.constant 7 : i32
    %436 = vector.broadcast %c7_i32 : i32 to vector<8x1xi32>
    %437 = arith.cmpi slt, %436, %15 : vector<8x1xi32>
    %c8_i32_64 = arith.constant 8 : i32
    %438 = arith.muli %c7_i32, %c8_i32_64 : i32
    %439 = tpu.assume_multiple %438, 8 : i32
    %440 = arith.index_cast %439 : i32 to index
    %c0_65 = arith.constant 0 : index
    %441 = vector.load %arg11[%440, %c0_65] : memref<64x128xf32, #tpu.memory_space<vmem>>, vector<8x128xf32>
    %442 = arith.truncf %404 : vector<8x32xf32> to vector<8x32xbf16>
    %cst_66 = arith.constant dense<0.000000e+00> : vector<8x128xf32>
    %443 = tpu.matmul %442, %9, %cst_66 {dimension_numbers = #tpu.dot_dimension_numbers<[1], [0], [0], [1], [0, 0, 1, 1], [], []>} : vector<8x32xbf16>, vector<32x128xbf16>, vector<8x128xf32> -> vector<8x128xf32>
    %444 = arith.addf %441, %443 : vector<8x128xf32>
    %445 = arith.negf %444 : vector<8x128xf32>
    %446 = math.exp %445 : vector<8x128xf32>
    %cst_67 = arith.constant 1.000000e+00 : f32
    %447 = vector.broadcast %cst_67 : f32 to vector<8x128xf32>
    %448 = arith.addf %447, %446 : vector<8x128xf32>
    %449 = arith.divf %447, %448 : vector<8x128xf32>
    %450 = math.tanh %444 : vector<8x128xf32>
    %451 = arith.select %21, %450, %449 : vector<8x128xi1>, vector<8x128xf32>
    %452 = vector.extract_strided_slice %451 {offsets = [0, 0], sizes = [8, 32], strides = [1, 1]} : vector<8x128xf32> to vector<8x32xf32>
    %453 = vector.extract_strided_slice %451 {offsets = [0, 32], sizes = [8, 32], strides = [1, 1]} : vector<8x128xf32> to vector<8x32xf32>
    %454 = vector.extract_strided_slice %451 {offsets = [0, 64], sizes = [8, 32], strides = [1, 1]} : vector<8x128xf32> to vector<8x32xf32>
    %455 = vector.extract_strided_slice %451 {offsets = [0, 96], sizes = [8, 32], strides = [1, 1]} : vector<8x128xf32> to vector<8x32xf32>
    %456 = arith.mulf %453, %407 : vector<8x32xf32>
    %457 = arith.mulf %452, %454 : vector<8x32xf32>
    %458 = arith.addf %456, %457 : vector<8x32xf32>
    %459 = math.tanh %458 : vector<8x32xf32>
    %460 = arith.mulf %455, %459 : vector<8x32xf32>
    %461 = vector.shape_cast %437 : vector<8x1xi1> to vector<8x1xi1>
    %462 = vector.broadcast %461 : vector<8x1xi1> to vector<8x32xi1>
    %463 = arith.select %462, %460, %404 : vector<8x32xi1>, vector<8x32xf32>
    %464 = vector.shape_cast %437 : vector<8x1xi1> to vector<8x1xi1>
    %465 = vector.broadcast %464 : vector<8x1xi1> to vector<8x32xi1>
    %466 = arith.select %465, %458, %407 : vector<8x32xi1>, vector<8x32xf32>
    %467 = arith.truncf %463 : vector<8x32xf32> to vector<8x32xbf16>
    %cst_68 = arith.constant dense<0.000000e+00> : vector<8x128xf32>
    %468 = tpu.matmul %467, %10, %cst_68 {dimension_numbers = #tpu.dot_dimension_numbers<[1], [0], [0], [1], [0, 0, 1, 1], [], []>} : vector<8x32xbf16>, vector<32x128xbf16>, vector<8x128xf32> -> vector<8x128xf32>
    %469 = arith.truncf %432 : vector<8x32xf32> to vector<8x32xbf16>
    %cst_69 = arith.constant dense<0.000000e+00> : vector<8x128xf32>
    %470 = tpu.matmul %469, %11, %cst_69 {dimension_numbers = #tpu.dot_dimension_numbers<[1], [0], [0], [1], [0, 0, 1, 1], [], []>} : vector<8x32xbf16>, vector<32x128xbf16>, vector<8x128xf32> -> vector<8x128xf32>
    %471 = arith.addf %468, %470 : vector<8x128xf32>
    %472 = arith.addf %471, %14 : vector<8x128xf32>
    %473 = arith.negf %472 : vector<8x128xf32>
    %474 = math.exp %473 : vector<8x128xf32>
    %cst_70 = arith.constant 1.000000e+00 : f32
    %475 = vector.broadcast %cst_70 : f32 to vector<8x128xf32>
    %476 = arith.addf %475, %474 : vector<8x128xf32>
    %477 = arith.divf %475, %476 : vector<8x128xf32>
    %478 = math.tanh %472 : vector<8x128xf32>
    %479 = arith.select %21, %478, %477 : vector<8x128xi1>, vector<8x128xf32>
    %480 = vector.extract_strided_slice %479 {offsets = [0, 0], sizes = [8, 32], strides = [1, 1]} : vector<8x128xf32> to vector<8x32xf32>
    %481 = vector.extract_strided_slice %479 {offsets = [0, 32], sizes = [8, 32], strides = [1, 1]} : vector<8x128xf32> to vector<8x32xf32>
    %482 = vector.extract_strided_slice %479 {offsets = [0, 64], sizes = [8, 32], strides = [1, 1]} : vector<8x128xf32> to vector<8x32xf32>
    %483 = vector.extract_strided_slice %479 {offsets = [0, 96], sizes = [8, 32], strides = [1, 1]} : vector<8x128xf32> to vector<8x32xf32>
    %484 = arith.mulf %481, %435 : vector<8x32xf32>
    %485 = arith.mulf %480, %482 : vector<8x32xf32>
    %486 = arith.addf %484, %485 : vector<8x32xf32>
    %487 = math.tanh %486 : vector<8x32xf32>
    %488 = arith.mulf %483, %487 : vector<8x32xf32>
    %489 = vector.shape_cast %437 : vector<8x1xi1> to vector<8x1xi1>
    %490 = vector.broadcast %489 : vector<8x1xi1> to vector<8x32xi1>
    %491 = arith.select %490, %488, %432 : vector<8x32xi1>, vector<8x32xf32>
    %492 = vector.shape_cast %437 : vector<8x1xi1> to vector<8x1xi1>
    %493 = vector.broadcast %492 : vector<8x1xi1> to vector<8x32xi1>
    %494 = arith.select %493, %486, %435 : vector<8x32xi1>, vector<8x32xf32>
    %c8_i32_71 = arith.constant 8 : i32
    %495 = arith.truncf %463 : vector<8x32xf32> to vector<8x32xbf16>
    %c0_72 = arith.constant 0 : index
    %c0_73 = arith.constant 0 : index
    %496 = vector.load %arg7[%c0_72, %c0_73] : memref<32x128xbf16, #tpu.memory_space<vmem>>, vector<32x128xbf16>
    %cst_74 = arith.constant dense<0.000000e+00> : vector<8x128xf32>
    %497 = tpu.matmul %495, %496, %cst_74 {dimension_numbers = #tpu.dot_dimension_numbers<[1], [0], [0], [1], [0, 0, 1, 1], [], []>} : vector<8x32xbf16>, vector<32x128xbf16>, vector<8x128xf32> -> vector<8x128xf32>
    %498 = arith.truncf %491 : vector<8x32xf32> to vector<8x32xbf16>
    %c0_75 = arith.constant 0 : index
    %c0_76 = arith.constant 0 : index
    %499 = vector.load %arg8[%c0_75, %c0_76] : memref<32x128xbf16, #tpu.memory_space<vmem>>, vector<32x128xbf16>
    %cst_77 = arith.constant dense<0.000000e+00> : vector<8x128xf32>
    %500 = tpu.matmul %498, %499, %cst_77 {dimension_numbers = #tpu.dot_dimension_numbers<[1], [0], [0], [1], [0, 0, 1, 1], [], []>} : vector<8x32xbf16>, vector<32x128xbf16>, vector<8x128xf32> -> vector<8x128xf32>
    %501 = arith.addf %497, %500 : vector<8x128xf32>
    %c0_78 = arith.constant 0 : index
    %c0_79 = arith.constant 0 : index
    %502 = vector.load %arg9[%c0_78, %c0_79] : memref<1x128xf32, #tpu.memory_space<vmem>>, vector<1x128xf32>
    %503 = vector.broadcast %502 : vector<1x128xf32> to vector<8x128xf32>
    %504 = arith.addf %501, %503 : vector<8x128xf32>
    %c0_80 = arith.constant 0 : index
    %c0_81 = arith.constant 0 : index
    %505 = vector.load %arg10[%c0_80, %c0_81] : memref<8x128xf32, #tpu.memory_space<vmem>>, vector<8x128xf32>
    tpu.vector_store %arg10[%c0_80, %c0_81], %504 {strides = array<i32>} : memref<8x128xf32, #tpu.memory_space<vmem>>, vector<8x128xf32>,
    return
  }
}

</mosaic_0001>

<bundles_post_ra>
// kernel: tpu_custom_call.1
= control target key start
LH: loop header
LB: loop body
LE: loop exit
PB: predicated region body
PF: predicated region fallthrough
CT: control target
= control target key end

     0   :  { %15 = vsyncpa [#allocation4], 0  ;;  %s3613_s0 = inlined_call_operand.vmem [shape: s32[64,1], index: 0, kind: input, shape index: {}]   ;;  %s3614_s1 = inlined_call_operand.vmem [shape: s32[8,1], index: 1, kind: input, shape index: {}]   ;;  %s3615_s2 = inlined_call_operand.vmem [shape: f32[64,128], index: 2, kind: input, shape index: {}]   ;;  %s3616_s3 = inlined_call_operand.vmem [shape: bf16[32,128], index: 3, kind: input, shape index: {}]   ;;  %s3617_s4 = inlined_call_operand.hbm [shape: bf16[32,128], index: 4, kind: input, shape index: {}]   ;;  %s3618_s5 = inlined_call_operand.hbm [shape: bf16[32,128], index: 5, kind: input, shape index: {}]   ;;  %s3619_s6 = inlined_call_operand.hbm [shape: f32[1,128], index: 6, kind: input, shape index: {}]   ;;  %s3620_s7 = inlined_call_operand.vmem [shape: bf16[32,128], index: 7, kind: input, shape index: {}]   ;;  %s3621_s8 = inlined_call_operand.hbm [shape: bf16[32,128], index: 8, kind: input, shape index: {}]   ;;  %s3622_s9 = inlined_call_operand.vmem [shape: f32[1,128], index: 9, kind: input, shape index: {}]   ;;  %s3623_s10 = inlined_call_operand.hbm [shape: f32[8,128], index: 10, kind: output, shape index: {}]  }
   0x1   :  { %16 = vsyncpa [#allocation7], 0 }
   0x2   :  { %17 = vsyncpa [#allocation10], 0 }
   0x3   :  { %18 = vsyncpa [#allocation5], 0  ;;  %s2767_s13 = smov [#allocation6]   ;;  %s2768_s15 = smov [#allocation3]  }
   0x4   :  { %s44_s14 = sshll.u32 %s2767_s13, 4  ;;  %s32_s16 = sshll.u32 %s2768_s15, 4  ;;  %s45_s14 = int_to_ptr.vmem [resolvable:$true] %s44_s14  ;;  %s2833_s16 = int_to_ptr.vmem [resolvable:$true] %s32_s16 }
   0x5   :  { %s2649_s19 = scalar_lea.hbm %s3618_s5, 256 }
   0x6   :  { %p2650_p0 = scmp.ne.s32.totalorder %s3618_s5, %s2649_s19  ;;  %p2653_p1 = scmp.lt.u32.totalorder %s2649_s19, %s3618_s5 }
   0x8   :  { %p2655_p2 = pnand %p2653_p1, %p2650_p0 }
   0xa   :  { %2658 = shalt.err (!%p2655_p2)
}
   0xb   :  { %s2659_s24 = scalar_lea.vmem %s45_s14, 256  ;;  %p2664_p4 = scmp.lt.s32.totalorder %s45_s14, %s45_s14 }
   0xc   :  { %p2660_p3 = scmp.ne.s32.totalorder %s45_s14, %s2659_s24  ;;  %p2665_p5 = scmp.lt.s32.totalorder %s2659_s24, %s2659_s24 }
   0xe   :  { %p2666_p6 = por %p2665_p5, %p2664_p4 }
  0x10   :  { %p2667_p7 = pnand %p2666_p6, %p2660_p3 }
  0x12   :  { %2670 = shalt.err (!%p2667_p7)
}
  0x13   :  { %s2769_s25 = smov 64   ;;  %s2770_s26 = smov 4  }
  0x14   :  { %50 = dma.hbm_to_vmem [thread:$0]  %s3618_s5, 256, %s45_s14, [#allocation7], %s2769_s25, %s2769_s25, %s2770_s26  }
  0x15   :  { %s2671_s11 = scalar_lea.hbm %s3617_s4, 256 }
  0x16   :  { %p2672_p8 = scmp.ne.s32.totalorder %s3617_s4, %s2671_s11  ;;  %p2675_p9 = scmp.lt.u32.totalorder %s2671_s11, %s3617_s4 }
  0x18   :  { %p2677_p10 = pnand %p2675_p9, %p2672_p8 }
  0x1a   :  { %2680 = shalt.err (!%p2677_p10)
}
  0x1b   :  { %s2681_s18 = scalar_lea.vmem %s2833_s16, 256  ;;  %p2686_p12 = scmp.lt.s32.totalorder %s2833_s16, %s2833_s16 }
  0x1c   :  { %p2682_p11 = scmp.ne.s32.totalorder %s2833_s16, %s2681_s18  ;;  %p2687_p13 = scmp.lt.s32.totalorder %s2681_s18, %s2681_s18 }
  0x1e   :  { %p2688_p0 = por %p2687_p13, %p2686_p12 }
  0x20   :  { %p2689_p1 = pnand %p2688_p0, %p2682_p11 }
  0x22   :  { %2692 = shalt.err (!%p2689_p1)
}
  0x23   :  { %38 = dma.hbm_to_vmem [thread:$0]  %s3617_s4, 256, %s2833_s16, [#allocation4], %s2769_s25, %s2769_s25, %s2770_s26  }
  0x24   :  { %s2771_s19 = smov [#allocation8]   ;;  %s2772_s21 = smov [#allocation9]  }
  0x25   :  { %s57_s20 = sshll.u32 %s2771_s19, 4  ;;  %s68_s22 = sshll.u32 %s2772_s21, 4  ;;  %s58_s20 = int_to_ptr.vmem [resolvable:$true] %s57_s20  ;;  %s2870_s22 = int_to_ptr.vmem [resolvable:$true] %s68_s22 }
  0x26   :  { %s2693_s27 = scalar_lea.hbm %s3619_s6, 16 }
  0x27   :  { %p2694_p2 = scmp.ne.s32.totalorder %s3619_s6, %s2693_s27  ;;  %p2697_p3 = scmp.lt.u32.totalorder %s2693_s27, %s3619_s6 }
  0x29   :  { %p2699_p4 = pnand %p2697_p3, %p2694_p2 }
  0x2b   :  { %2702 = shalt.err (!%p2699_p4)
}
  0x2c   :  { %s2703_s4 = scalar_lea.vmem %s58_s20, 16  ;;  %s2707_s16 = scalar_lea.vmem %s58_s20, 32 }
  0x2d   :  { %p2704_p5 = scmp.ne.s32.totalorder %s58_s20, %s2703_s4  ;;  %p2708_p6 = scmp.lt.s32.totalorder %s58_s20, %s58_s20 }
  0x2e   :  { %p2709_p7 = scmp.lt.s32.totalorder %s2707_s16, %s2703_s4 }
  0x30   :  { %p2710_p8 = por %p2709_p7, %p2708_p6 }
  0x32   :  { %p2711_p9 = pnand %p2710_p8, %p2704_p5 }
  0x34   :  { %2714 = shalt.err (!%p2711_p9)
}
  0x35   :  { %60 = dma.hbm_to_vmem [thread:$0]  %s3619_s6, 16, %s58_s20, [#allocation7]  }
  0x36   :  { %s2715_s18 = scalar_lea.hbm %s3621_s8, 256 }
  0x37   :  { %p2716_p10 = scmp.ne.s32.totalorder %s3621_s8, %s2715_s18  ;;  %p2719_p11 = scmp.lt.u32.totalorder %s2715_s18, %s3621_s8 }
  0x39   :  { %p2721_p12 = pnand %p2719_p11, %p2716_p10 }
  0x3b   :  { %2724 = shalt.err (!%p2721_p12)
}
  0x3c   :  { %s2725_s23 = scalar_lea.vmem %s2870_s22, 256  ;;  %p2730_p0 = scmp.lt.s32.totalorder %s2870_s22, %s2870_s22 }
  0x3d   :  { %p2726_p13 = scmp.ne.s32.totalorder %s2870_s22, %s2725_s23  ;;  %p2731_p1 = scmp.lt.s32.totalorder %s2725_s23, %s2725_s23 }
  0x3f   :  { %p2732_p2 = por %p2731_p1, %p2730_p0 }
  0x41   :  { %p2733_p3 = pnand %p2732_p2, %p2726_p13 }
  0x43   :  { %2736 = shalt.err (!%p2733_p3)
}
  0x44   :  { %74 = dma.hbm_to_vmem [thread:$0]  %s3621_s8, 256, %s2870_s22, [#allocation10], %s2769_s25, %s2769_s25, %s2770_s26  }
  0x45   :  { %2759 = dma.done.wait [#allocation4], 256  }
  0x46   :  { %2760 = vsyncadd [#allocation4], 4294967040 }
  0x47   :  { %2761 = dma.done.wait [#allocation7], 272  }
  0x48   :  { %2762 = vsyncadd [#allocation7], 4294967024 }
  0x49   :  { %2763 = dma.done.wait [#allocation10], 256  }
  0x4a   :  { %2764 = vsyncadd [#allocation10], 4294967040  ;;  %v2773_v0 = vmov 0   ;;  %v2774_v1 = vmov 0.0   ;;  %v90_v2 = vld [vmem:[%s3613_s0] sm:$0xff]  ;;  %v91_v4 = vld [vmem:[%s3613_s0 + $0x8] sm:$0xff]  ;;  %v98_v23 = vlaneseq }
  0x4b   :  { %2501 = vset.pattern.permute.xlu0 %v2773_v0  ;;  %2266 = vmatprep.subr.bf16.mxu1 %v2774_v1  ;;  %v2913_v3 = vld [vmem:[%s3614_s1] sm:$0xff]  ;;  %v149_v6 = vld [vmem:[%s3615_s2 + $0x8] sm:$0xff]  ;;  %v150_v7 = vld [vmem:[%s3615_s2 + $0x10] sm:$0xff]  ;;  %vm2775_vm1 = vmmov 0   ;;  %vm156_vm2 = vcmask 523264   ;;  %s2776_s11 = smov 32  }
  0x4c   :  { %2502 = vset.pattern.permute.xlu1 %v2773_v0  ;;  %101 = vperm.xlu0 %2501, %v90_v2   ;;  %vm317_vm0 = vcmp.gt.s32.totalorder %v2913_v3, 0  ;;  %v148_v5 = vld [vmem:[%s3615_s2] sm:$0xff]  ;;  %v151_v9 = vld [vmem:[%s3615_s2 + $0x18] sm:$0xff]  ;;  %v153_v13 = vld [vmem:[%s3615_s2 + $0x28] sm:$0xff]  ;;  %v2973_v24 = vand.u32 127, %v98_v23  ;;  %vm331_vm15 = vcmask 261120  }
  0x4d   :  { %v2474_v8 = vpack.c.bf16 %v149_v6, %v148_v5  ;;  %v2478_v10 = vpack.c.bf16 %v151_v9, %v150_v7  ;;  %v2934_v11 = vld [vmem:[%s3616_s3] sm:$0xff]   ;;  %2270 = vmatprep.mubr.msk.bf16.mxu1 %vm2775_vm1, %v2774_v1  ;;  %v2947_v14 = vld [vmem:[%s3616_s3 + $0x8] sm:$0xff]   ;;  %v401_v15 = vsel %vm317_vm0, 1, %v2773_v0  ;;  %v154_v16 = vld [vmem:[%s3615_s2 + $0x30] sm:$0xff]  ;;  %vm547_vm0 = vcmp.gt.s32.totalorder %v2913_v3, 1  ;;  %s2777_s24 = smov [#allocation11]  }
  0x4e   :  { %v152_v12 = vld [vmem:[%s3615_s2 + $0x20] sm:$0xff]  ;;  %2267 = vmatpush3.bf16.msra.mxu1 %v2934_v11  ;;  %v155_v17 = vld [vmem:[%s3615_s2 + $0x38] sm:$0xff]  ;;  %v92_v19 = vld [vmem:[%s3613_s0 + $0x10] sm:$0xff]  ;;  %vm314_vm6 = vcmp.ge.s32.totalorder %v2973_v24, 64  ;;  %vm315_vm7 = vcmp.lt.s32.totalorder %v2973_v24, 96  ;;  %s2065_s27 = sshll.u32 %s2777_s24, 4  ;;  %s2066_s27 = int_to_ptr.vmem [resolvable:$true] %s2065_s27 }
  0x4f   :  { %2475 = vmatprep.subr.bf16.mxu0 %v2474_v8  ;;  %v2482_v18 = vpack.c.bf16 %v153_v13, %v152_v12  ;;  %2268 = vmatprep.subr.bf16.mxu1 %v2774_v1  ;;  %v2486_v20 = vpack.c.bf16 %v155_v17, %v154_v16  ;;  %v94_v21 = vld [vmem:[%s3613_s0 + $0x20] sm:$0xff]  ;;  %v96_v22 = vld [vmem:[%s3613_s0 + $0x30] sm:$0xff]  ;;  %vm2994_vm8 = vmand %vm314_vm6, %vm315_vm7  ;;  %vm1141_vm7 = vcmp.gt.s32.totalorder %v2913_v3, 4  ;;  %p2742_p5 = scmp.lt.s32.totalorder %s2066_s27, %s2066_s27 }
  0x50   :  { %104 = vperm.xlu0 %2501, %v91_v4   ;;  %2477 = vmatpush3.bf16.msra.mxu0 %v2474_v8  ;;  %v93_v52 = vld [vmem:[%s3613_s0 + $0x18] sm:$0xff]  ;;  %v95_v53 = vld [vmem:[%s3613_s0 + $0x28] sm:$0xff]  ;;  %v3015_v55 = vld [vmem:[#allocation6] sm:$0xff]  }
  0x51   :  { %2479 = vmatprep.subr.bf16.mxu0 %v2478_v10  ;;  %v97_v54 = vld [vmem:[%s3613_s0 + $0x38] sm:$0xff]  ;;  %v3022_v57 = vld [vmem:[#allocation3] sm:$0xff]   ;;  %v3027_v58 = vld [vmem:[#allocation3 + $0x8] sm:$0xff]  }
  0x52   :  { %2269 = vmatpush3.bf16.msra.mxu1 %v2947_v14  ;;  %v3018_v56 = vld [vmem:[#allocation6 + $0x8] sm:$0xff]  }
  0x53   :  { %2274 = vmatprep.subr.bf16.mxu1 %v2774_v1 }
  0x54   :  { %403 = vperm.xlu0 %2501, %v401_v15   ;;  %2481 = vmatpush3.bf16.msra.mxu0 %v2478_v10 }
  0x55   :  { %2483 = vmatprep.subr.bf16.mxu0 %v2482_v18  ;;  %2271 = vmatmul.mubr.bf16.vlgmr.msra.gmra.mrb[0].mxu1 %v2773_v0 }
  0x56   :  { %2278 = vmatprep.mubr.msk.bf16.mxu1 %vm2775_vm1, %v2774_v1  ;;  %2275 = vmatpush3.bf16.msra.mxu1 %v3015_v55 }
  0x57   :  { %2276 = vmatprep.subr.bf16.mxu1 %v2774_v1 }
  0x58   :  { %107 = vperm.xlu0 %2501, %v92_v19   ;;  %2485 = vmatpush3.bf16.msra.mxu0 %v2482_v18 }
  0x59   :  { %2487 = vmatprep.subr.bf16.mxu0 %v2486_v20 }
  0x5a   :  { %2277 = vmatpush3.bf16.msra.mxu1 %v3018_v56 }
  0x5b   :  { %2282 = vmatprep.subr.bf16.mxu1 %v2774_v1 }
  0x5c   :  { %113 = vperm.xlu0 %2501, %v94_v21   ;;  %2489 = vmatpush3.bf16.msra.mxu0 %v2486_v20 }
  0x5d   :  { %2290 = vmatprep.subr.bf16.mxu0 %v2774_v1  ;;  %2279 = vmatmul.mubr.bf16.vlgmr.msra.gmra.mrb[4].mxu1 %v2773_v0 }
  0x5e   :  { %2283 = vmatpush3.bf16.msra.mxu1 %v3022_v57  ;;  %2286 = vmatprep.mubr.msk.bf16.mxu1 %vm2775_vm1, %v2774_v1 }
  0x5f   :  { %2284 = vmatprep.subr.bf16.mxu1 %v2774_v1 }
  0x60   :  { %119 = vperm.xlu0 %2501, %v96_v22  }
  0x62   :  { %2285 = vmatpush3.bf16.msra.mxu1 %v3027_v58 }
  0x63   :  { %2298 = vmatprep.subr.bf16.mxu1 %v2774_v1 }
  0xcb   :  { %v102_v25 = vpop.permute.xlu0 %101 }
  0xcc   :  { %vm124_vm3 = vcmp.eq.s32.totalorder %v2973_v24, %v102_v25  ;;  %v3085_v25 = vld [vmem:[#allocation8] ss:$0 sm:$0xff] }
  0xcd   :  { %v2076_v26 = vsel %vm124_vm3, 1.0, %v2774_v1  ;;  %vm745_vm3 = vcmp.gt.s32.totalorder %v2913_v3, 2 }
  0xce   :  { %2254 = vmatprep.mubr.msk.f32.mxu0 %vm156_vm2, %v2076_v26 }
  0xcf   :  { %v105_v27 = vpop.permute.xlu0 %104 }
  0xd0   :  { %vm125_vm4 = vcmp.eq.s32.totalorder %v2973_v24, %v105_v27 }
  0xd1   :  { %v2077_v28 = vsel %vm125_vm4, 1.0, %v2774_v1 }
  0xd2   :  { %2255 = vmatmul.mubr.msk.f32.vlgmr.msra.gmra.mrb[0].mxu0 %vm156_vm2, %v2077_v28 }
  0xd3   :  { %v2981_v29 = vpop.permute.xlu0 %403  ;;  %2291 = vmatpush3.bf16.msra.mxu0 %v2934_v11 }
  0xd4   :  { %2292 = vmatprep.subr.bf16.mxu0 %v2774_v1  ;;  %vm405_vm9 = vcmp.eq.s32.totalorder %v2981_v29, 1 }
  0xd7   :  { %v108_v30 = vpop.permute.xlu0 %107  ;;  %2293 = vmatpush3.bf16.msra.mxu0 %v2947_v14 }
  0xd8   :  { %vm126_vm5 = vcmp.eq.s32.totalorder %v2973_v24, %v108_v30  ;;  %2306 = vmatprep.subr.bf16.mxu0 %v2774_v1 }
  0xd9   :  { %v2078_v31 = vsel %vm126_vm5, 1.0, %v2774_v1  ;;  %vm943_vm5 = vcmp.gt.s32.totalorder %v2913_v3, 3 }
  0xda   :  { %2257 = vmatprep.mubr.msk.f32.mxu0 %vm156_vm2, %v2078_v31 }
  0xdb   :  { %v114_v63 = vpop.permute.xlu0 %113 }
  0xdc   :  { %vm128_vm10 = vcmp.eq.s32.totalorder %v2973_v24, %v114_v63 }
  0xdd   :  { %v2080_v6 = vsel %vm128_vm10, 1.0, %v2774_v1 }
  0xdf   :  { %v120_v4 = vpop.permute.xlu0 %119 }
  0xe0   :  { %vm130_vm12 = vcmp.eq.s32.totalorder %v2973_v24, %v120_v4 }
  0xe1   :  { %v2082_v9 = vsel %vm130_vm12, 1.0, %v2774_v1 }
 0x128   :  { %v369_v32 = vpop.f32.mrb[0].mxu1 }
 0x129   :  { %v2272_v33 = vpop.f32.mrb[1].mxu1 }
 0x12a   :  { %v372_v34 = vpop.f32.mrb[2].mxu1 }
 0x12b   :  { %v2273_v35 = vpop.f32.mrb[3].mxu1 }
 0x130   :  { %v455_v13 = vpop.f32.mrb[4].mxu1 }
 0x131   :  { %v2280_v15 = vpop.f32.mrb[5].mxu1 }
 0x132   :  { %v458_v16 = vpop.f32.mrb[6].mxu1 }
 0x133   :  { %v2281_v18 = vpop.f32.mrb[7].mxu1 }
 0x1a5   :  { %v2990_v36 = vpop.f32.mrb[0].mxu0 }
 0x1a6   :  { %v247_v37 = vpop.f32.mrb[1].mxu0 }
 0x1a7   :  { %v375_v38 = vadd.f32 %v369_v32, %v247_v37 }
 0x1a9   :  { %v2095_v39 = vmul.f32 -1.442695, %v375_v38 }
 0x1ab   :  { %2513 = vpow2.f32 %v2095_v39 }
 0x1ac   :  { %2515 = vtanh.f32 %v375_v38 }
 0x1b5   :  { %v2514_v40 = vpop.eup %2513 }
 0x1b6   :  { %v379_v41 = vadd.f32 1.0, %v2514_v40  ;;  %v2516_v43 = vpop.eup %2515 }
 0x1b8   :  { %2517 = vrcp.f32 %v379_v41 }
 0x1c2   :  { %v2518_v44 = vpop.eup %2517 }
 0x1c3   :  { %v383_v45 = vsel %vm2994_vm8, %v2516_v43, %v2518_v44 }
 0x1c4   :  { %386 = vrot.lane.b32.xlu1 %v383_v45, %s2769_s25  ;;  %v384_v48 = vmul.f32 0.0, %v383_v45 }
 0x236   :  { %v387_v46 = vpop.permute.xlu1 %386 }
 0x237   :  { %v389_v47 = vmul.f32 %v387_v46, %v383_v45 }
 0x239   :  { %391 = vrot.lane.b32.xlu1 %v389_v47, %s2776_s11 }
 0x2ab   :  { %v392_v49 = vpop.permute.xlu1 %391 }
 0x2ac   :  { %v3002_v50 = vadd.f32 %v392_v49, %v384_v48 }
 0x2ae   :  { %2519 = vtanh.f32 %v3002_v50 }
 0x2b8   :  { %v2520_v51 = vpop.eup %2519 }
 0x2b9   :  { %397 = vrot.lane.b32.xlu1 %v2520_v51, %s2769_s25 }
 0x2bd   :  { %110 = vperm.xlu1 %2502, %v93_v52  }
 0x2c1   :  { %116 = vperm.xlu1 %2502, %v95_v53  }
 0x2c5   :  { %122 = vperm.xlu1 %2502, %v97_v54  }
 0x32b   :  { %v398_v59 = vpop.permute.xlu1 %397 }
 0x32c   :  { %v400_v60 = vmul.f32 %v398_v59, %v383_v45 }
 0x32e   :  { %v3037_v61 = vsel %vm405_vm9, %v400_v60, 0.0  ;;  %v616_v60 = vsel %vm547_vm0, 1, %v2773_v0 }
 0x32f   :  { %v408_v62 = vpack.c.bf16 %v3037_v61, %v3037_v61 }
 0x331   :  { %462 = vrot.lane.b32.xlu0 %v408_v62, %s2776_s11  ;;  %v3102_v62 = vsel %vm405_vm9, %v3002_v50, 0.0 }
 0x33c   :  { %v111_v2 = vpop.permute.xlu1 %110 }
 0x33d   :  { %vm127_vm11 = vcmp.eq.s32.totalorder %v2973_v24, %v111_v2 }
 0x33e   :  { %v2079_v5 = vsel %vm127_vm11, 1.0, %v2774_v1 }
 0x33f   :  { %2258 = vmatmul.mubr.msk.f32.gmra.mrb[2].mxu0 %vm156_vm2, %v2079_v5 }
 0x340   :  { %v117_v7 = vpop.permute.xlu1 %116  ;;  %2260 = vmatprep.mubr.msk.f32.mxu0 %vm156_vm2, %v2080_v6 }
 0x341   :  { %vm129_vm13 = vcmp.eq.s32.totalorder %v2973_v24, %v117_v7 }
 0x342   :  { %v2081_v8 = vsel %vm129_vm13, 1.0, %v2774_v1 }
 0x343   :  { %2261 = vmatmul.mubr.msk.f32.gmra.mrb[4].mxu0 %vm156_vm2, %v2081_v8 }
 0x344   :  { %2263 = vmatprep.mubr.msk.f32.mxu0 %vm156_vm2, %v2082_v9  ;;  %v123_v10 = vpop.permute.xlu1 %122 }
 0x345   :  { %vm131_vm14 = vcmp.eq.s32.totalorder %v2973_v24, %v123_v10 }
 0x346   :  { %v2083_v12 = vsel %vm131_vm14, 1.0, %v2774_v1 }
 0x347   :  { %2264 = vmatmul.mubr.msk.f32.gmra.mrb[6].mxu0 %vm156_vm2, %v2083_v12 }
 0x348   :  { %2294 = vmatprep.mubr.msk.bf16.mxu0 %vm2775_vm1, %v2774_v1 }
 0x3a3   :  { %v463_v17 = vpop.permute.xlu0 %462 }
 0x3a4   :  { %2287 = vmatmul.mubr.msk.bf16.vlgmr.msra.gmra.mrb[8].mxu1 %vm331_vm15, %v463_v17  ;;  %2295 = vmatmul.mubr.msk.bf16.vlgmr.msra.gmra.mrb[8].mxu0 %vm331_vm15, %v463_v17 }
 0x3a5   :  { %2307 = vmatpush3.bf16.msra.mxu0 %v3022_v57  ;;  %2299 = vmatpush3.bf16.msra.mxu1 %v3015_v55 }
 0x3a6   :  { %2308 = vmatprep.subr.bf16.mxu0 %v2774_v1  ;;  %2300 = vmatprep.subr.bf16.mxu1 %v2774_v1 }
 0x3a7   :  { %2310 = vmatprep.mubr.msk.bf16.mxu0 %vm2775_vm1, %v2774_v1  ;;  %2302 = vmatprep.mubr.msk.bf16.mxu1 %vm2775_vm1, %v2774_v1 }
 0x3a9   :  { %2309 = vmatpush3.bf16.msra.mxu0 %v3027_v58  ;;  %2301 = vmatpush3.bf16.msra.mxu1 %v3018_v56 }
 0x3aa   :  { %2314 = vmatprep.subr.bf16.mxu1 %v2774_v1  ;;  %2322 = vmatprep.subr.bf16.mxu0 %v2774_v1 }
 0x412   :  { %v3073_v19 = vpop.f32.mrb[2].mxu0 }
 0x413   :  { %v3075_v20 = vpop.f32.mrb[3].mxu0 }
 0x416   :  { %v3077_v21 = vpop.f32.mrb[4].mxu0 }
 0x417   :  { %v3079_v22 = vpop.f32.mrb[5].mxu0 }
 0x41a   :  { %v3081_v23 = vpop.f32.mrb[6].mxu0 }
 0x41b   :  { %v3083_v24 = vpop.f32.mrb[7].mxu0 }
 0x477   :  { %v513_v26 = vpop.f32.mrb[8].mxu1  ;;  %v584_v27 = vpop.f32.mrb[8].mxu0 }
 0x478   :  { %v514_v28 = vadd.f32 %v513_v26, %v455_v13  ;;  %v590_v30 = vadd.f32 %v2990_v36, %v584_v27  ;;  %v2288_v31 = vpop.f32.mrb[9].mxu1  ;;  %v2296_v32 = vpop.f32.mrb[9].mxu0 }
 0x479   :  { %v516_v33 = vpop.f32.mrb[10].mxu1  ;;  %v587_v34 = vpop.f32.mrb[10].mxu0 }
 0x47a   :  { %v519_v35 = vadd.f32 %v3085_v25, %v514_v28  ;;  %v2103_v37 = vmul.f32 -1.442695, %v590_v30  ;;  %v2289_v38 = vpop.f32.mrb[11].mxu1  ;;  %v2297_v39 = vpop.f32.mrb[11].mxu0 }
 0x47c   :  { %v2101_v40 = vmul.f32 -1.442695, %v519_v35  ;;  %2521 = vpow2.f32 %v2103_v37 }
 0x47e   :  { %2523 = vpow2.f32 %v2101_v40 }
 0x47f   :  { %2525 = vtanh.f32 %v590_v30 }
 0x480   :  { %2527 = vtanh.f32 %v519_v35 }
 0x486   :  { %v2522_v41 = vpop.eup %2521 }
 0x487   :  { %v594_v44 = vadd.f32 1.0, %v2522_v41 }
 0x488   :  { %v2524_v43 = vpop.eup %2523 }
 0x489   :  { %v523_v45 = vadd.f32 1.0, %v2524_v43  ;;  %2529 = vrcp.f32 %v594_v44  ;;  %v2526_v36 = vpop.eup %2525 }
 0x48a   :  { %v2528_v46 = vpop.eup %2527 }
 0x48b   :  { %2531 = vrcp.f32 %v523_v45 }
 0x493   :  { %v2530_v47 = vpop.eup %2529 }
 0x494   :  { %v598_v49 = vsel %vm2994_vm8, %v2526_v36, %v2530_v47 }
 0x495   :  { %v2532_v48 = vpop.eup %2531  ;;  %601 = vrot.lane.b32.xlu0 %v598_v49, %s2769_s25  ;;  %v599_v63 = vmul.f32 %v598_v49, %v3102_v62 }
 0x496   :  { %v527_v51 = vsel %vm2994_vm8, %v2528_v46, %v2532_v48 }
 0x497   :  { %530 = vrot.lane.b32.xlu1 %v527_v51, %s2769_s25  ;;  %v528_v4 = vmul.f32 0.0, %v527_v51 }
 0x507   :  { %v602_v52 = vpop.permute.xlu0 %601 }
 0x508   :  { %v604_v53 = vmul.f32 %v602_v52, %v598_v49 }
 0x509   :  { %v531_v54 = vpop.permute.xlu1 %530 }
 0x50a   :  { %v533_v59 = vmul.f32 %v531_v54, %v527_v51  ;;  %606 = vrot.lane.b32.xlu0 %v604_v53, %s2776_s11 }
 0x50c   :  { %535 = vrot.lane.b32.xlu1 %v533_v59, %s2776_s11 }
 0x510   :  { %618 = vperm.xlu1 %2502, %v616_v60  }
 0x57c   :  { %v607_v2 = vpop.permute.xlu0 %606 }
 0x57d   :  { %v3105_v5 = vadd.f32 %v607_v2, %v599_v63 }
 0x57e   :  { %v536_v6 = vpop.permute.xlu1 %535 }
 0x57f   :  { %v3107_v7 = vadd.f32 %v536_v6, %v528_v4  ;;  %2533 = vtanh.f32 %v3105_v5 }
 0x581   :  { %2535 = vtanh.f32 %v3107_v7 }
 0x589   :  { %v2534_v8 = vpop.eup %2533 }
 0x58a   :  { %612 = vrot.lane.b32.xlu1 %v2534_v8, %s2769_s25  ;;  %v814_v8 = vsel %vm745_vm3, 1, %v2773_v0 }
 0x58b   :  { %v2536_v9 = vpop.eup %2535 }
 0x58c   :  { %541 = vrot.lane.b32.xlu0 %v2536_v9, %s2769_s25  ;;  %v3167_v9 = vsel %vm405_vm9, %v3107_v7, 0.0 }
 0x58f   :  { %v3113_v50 = vpop.permute.xlu1 %618 }
 0x590   :  { %vm620_vm2 = vcmp.eq.s32.totalorder %v3113_v50, 1 }
 0x5fc   :  { %v613_v10 = vpop.permute.xlu1 %612 }
 0x5fd   :  { %v615_v12 = vmul.f32 %v613_v10, %v598_v49 }
 0x5fe   :  { %v542_v13 = vpop.permute.xlu0 %541 }
 0x5ff   :  { %v544_v15 = vmul.f32 %v542_v13, %v527_v51  ;;  %v3119_v16 = vsel %vm620_vm2, %v615_v12, %v3037_v61 }
 0x600   :  { %v623_v18 = vpack.c.bf16 %v3119_v16, %v3119_v16 }
 0x601   :  { %v3123_v17 = vsel %vm405_vm9, %v544_v15, 0.0  ;;  %v3177_v15 = vsel %vm620_vm2, %v3105_v5, %v3102_v62 }
 0x602   :  { %v624_v26 = vpack.c.bf16 %v3123_v17, %v3123_v17  ;;  %672 = vrot.lane.b32.xlu1 %v623_v18, %s2776_s11 }
 0x604   :  { %626 = vrot.lane.b32.xlu0 %v624_v26, %s2776_s11 }
 0x674   :  { %v673_v27 = vpop.permute.xlu1 %672 }
 0x675   :  { %2311 = vmatmul.mubr.msk.bf16.vlgmr.msra.gmra.mrb[12].mxu0 %vm331_vm15, %v673_v27 }
 0x676   :  { %v627_v28 = vpop.permute.xlu0 %626  ;;  %2323 = vmatpush3.bf16.msra.mxu0 %v3015_v55  ;;  %2326 = vmatprep.mubr.msk.bf16.mxu0 %vm2775_vm1, %v2774_v1 }
 0x677   :  { %2303 = vmatmul.mubr.msk.bf16.vlgmr.msra.gmra.mrb[12].mxu1 %vm331_vm15, %v627_v28  ;;  %2324 = vmatprep.subr.bf16.mxu0 %v2774_v1 }
 0x678   :  { %2315 = vmatpush3.bf16.msra.mxu1 %v2934_v11  ;;  %2318 = vmatprep.mubr.msk.bf16.mxu1 %vm2775_vm1, %v2774_v1 }
 0x679   :  { %2316 = vmatprep.subr.bf16.mxu1 %v2774_v1 }
 0x67a   :  { %2325 = vmatpush3.bf16.msra.mxu0 %v3018_v56 }
 0x67b   :  { %2338 = vmatprep.subr.bf16.mxu0 %v2774_v1 }
 0x67c   :  { %2317 = vmatpush3.bf16.msra.mxu1 %v2947_v14 }
 0x67d   :  { %2330 = vmatprep.subr.bf16.mxu1 %v2774_v1 }
 0x67f   :  { %2319 = vmatmul.mubr.msk.bf16.vlgmr.msra.gmra.mrb[16].mxu1 %vm331_vm15, %v673_v27 }
 0x680   :  { %2331 = vmatpush3.bf16.msra.mxu1 %v3022_v57  ;;  %2334 = vmatprep.mubr.msk.bf16.mxu1 %vm2775_vm1, %v2774_v1 }
 0x681   :  { %2332 = vmatprep.subr.bf16.mxu1 %v2774_v1 }
 0x684   :  { %2333 = vmatpush3.bf16.msra.mxu1 %v3027_v58 }
 0x685   :  { %2346 = vmatprep.subr.bf16.mxu1 %v2774_v1 }
 0x748   :  { %v711_v61 = vpop.f32.mrb[12].mxu0 }
 0x749   :  { %v2312_v30 = vpop.f32.mrb[13].mxu0 }
 0x74a   :  { %v665_v31 = vpop.f32.mrb[12].mxu1  ;;  %v714_v33 = vpop.f32.mrb[14].mxu0 }
 0x74b   :  { %v712_v32 = vadd.f32 %v711_v61, %v665_v31  ;;  %v2304_v34 = vpop.f32.mrb[13].mxu1  ;;  %v2313_v35 = vpop.f32.mrb[15].mxu0 }
 0x74c   :  { %v668_v37 = vpop.f32.mrb[14].mxu1 }
 0x74d   :  { %v717_v38 = vadd.f32 %v3085_v25, %v712_v32  ;;  %v2305_v39 = vpop.f32.mrb[15].mxu1 }
 0x74f   :  { %v2106_v40 = vmul.f32 -1.442695, %v717_v38 }
 0x751   :  { %2537 = vpow2.f32 %v2106_v40 }
 0x752   :  { %v782_v41 = vpop.f32.mrb[16].mxu1 }
 0x753   :  { %v788_v43 = vadd.f32 %v782_v41, %v3075_v20  ;;  %v2320_v44 = vpop.f32.mrb[17].mxu1 }
 0x754   :  { %v785_v45 = vpop.f32.mrb[18].mxu1 }
 0x755   :  { %v2108_v36 = vmul.f32 -1.442695, %v788_v43  ;;  %v2321_v46 = vpop.f32.mrb[19].mxu1 }
 0x757   :  { %2539 = vpow2.f32 %v2108_v36 }
 0x758   :  { %2541 = vtanh.f32 %v717_v38 }
 0x75b   :  { %v2538_v47 = vpop.eup %2537 }
 0x75c   :  { %v721_v48 = vadd.f32 1.0, %v2538_v47 }
 0x75e   :  { %2543 = vrcp.f32 %v721_v48 }
 0x75f   :  { %2545 = vtanh.f32 %v788_v43 }
 0x761   :  { %v2540_v49 = vpop.eup %2539 }
 0x762   :  { %v792_v51 = vadd.f32 1.0, %v2540_v49  ;;  %v2542_v52 = vpop.eup %2541 }
 0x764   :  { %2547 = vrcp.f32 %v792_v51 }
 0x768   :  { %v2544_v53 = vpop.eup %2543 }
 0x769   :  { %v725_v54 = vsel %vm2994_vm8, %v2542_v52, %v2544_v53  ;;  %v2546_v20 = vpop.eup %2545 }
 0x76a   :  { %728 = vrot.lane.b32.xlu0 %v725_v54, %s2769_s25  ;;  %v726_v10 = vmul.f32 %v725_v54, %v3167_v9 }
 0x76e   :  { %v2548_v59 = vpop.eup %2547 }
 0x76f   :  { %v796_v60 = vsel %vm2994_vm8, %v2546_v20, %v2548_v59 }
 0x770   :  { %799 = vrot.lane.b32.xlu1 %v796_v60, %s2769_s25  ;;  %v797_v18 = vmul.f32 %v796_v60, %v3177_v15 }
 0x7dc   :  { %v729_v63 = vpop.permute.xlu0 %728 }
 0x7dd   :  { %v731_v2 = vmul.f32 %v729_v63, %v725_v54 }
 0x7df   :  { %733 = vrot.lane.b32.xlu0 %v731_v2, %s2776_s11 }
 0x7e2   :  { %v800_v4 = vpop.permute.xlu1 %799 }
 0x7e3   :  { %v802_v6 = vmul.f32 %v800_v4, %v796_v60 }
 0x7e5   :  { %804 = vrot.lane.b32.xlu1 %v802_v6, %s2776_s11 }
 0x7e9   :  { %816 = vperm.xlu1 %2502, %v814_v8  }
 0x851   :  { %v734_v12 = vpop.permute.xlu0 %733 }
 0x852   :  { %v3170_v13 = vadd.f32 %v734_v12, %v726_v10 }
 0x854   :  { %2549 = vtanh.f32 %v3170_v13 }
 0x857   :  { %v805_v26 = vpop.permute.xlu1 %804 }
 0x858   :  { %v3180_v27 = vadd.f32 %v805_v26, %v797_v18 }
 0x85a   :  { %2551 = vtanh.f32 %v3180_v27 }
 0x85e   :  { %v2550_v29 = vpop.eup %2549 }
 0x85f   :  { %739 = vrot.lane.b32.xlu0 %v2550_v29, %s2769_s25  ;;  %v1012_v29 = vsel %vm943_vm5, 1, %v2773_v0 }
 0x864   :  { %v2552_v7 = vpop.eup %2551 }
 0x865   :  { %810 = vrot.lane.b32.xlu0 %v2552_v7, %s2769_s25  ;;  %v3241_v7 = vsel %vm620_vm2, %v3170_v13, %v3167_v9 }
 0x868   :  { %v3192_v30 = vpop.permute.xlu1 %816 }
 0x869   :  { %vm818_vm4 = vcmp.eq.s32.totalorder %v3192_v30, 1 }
 0x8d1   :  { %v740_v28 = vpop.permute.xlu0 %739 }
 0x8d2   :  { %v742_v61 = vmul.f32 %v740_v28, %v725_v54  ;;  %v3247_v28 = vsel %vm818_vm4, %v3180_v27, %v3177_v15 }
 0x8d4   :  { %v3188_v62 = vsel %vm620_vm2, %v742_v61, %v3123_v17 }
 0x8d5   :  { %v822_v5 = vpack.c.bf16 %v3188_v62, %v3188_v62 }
 0x8d7   :  { %824 = vrot.lane.b32.xlu1 %v822_v5, %s2776_s11  ;;  %v811_v31 = vpop.permute.xlu0 %810 }
 0x8d8   :  { %v813_v32 = vmul.f32 %v811_v31, %v796_v60 }
 0x8da   :  { %v3199_v33 = vsel %vm818_vm4, %v813_v32, %v3119_v16 }
 0x8db   :  { %v821_v17 = vpack.c.bf16 %v3199_v33, %v3199_v33 }
 0x8dd   :  { %870 = vrot.lane.b32.xlu0 %v821_v17, %s2776_s11 }
 0x949   :  { %v825_v34 = vpop.permute.xlu1 %824 }
 0x94a   :  { %2327 = vmatmul.mubr.msk.bf16.vlgmr.msra.gmra.mrb[16].mxu0 %vm331_vm15, %v825_v34 }
 0x94b   :  { %2339 = vmatpush3.bf16.msra.mxu0 %v2934_v11  ;;  %2342 = vmatprep.mubr.msk.bf16.mxu0 %vm2775_vm1, %v2774_v1 }
 0x94c   :  { %2340 = vmatprep.subr.bf16.mxu0 %v2774_v1 }
 0x94f   :  { %2341 = vmatpush3.bf16.msra.mxu0 %v2947_v14  ;;  %v871_v35 = vpop.permute.xlu0 %870 }
 0x950   :  { %2335 = vmatmul.mubr.msk.bf16.vlgmr.msra.gmra.mrb[20].mxu1 %vm331_vm15, %v871_v35  ;;  %2354 = vmatprep.subr.bf16.mxu0 %v2774_v1 }
 0x951   :  { %2347 = vmatpush3.bf16.msra.mxu1 %v3015_v55  ;;  %2350 = vmatprep.mubr.msk.bf16.mxu1 %vm2775_vm1, %v2774_v1 }
 0x952   :  { %2343 = vmatmul.mubr.msk.bf16.vlgmr.msra.gmra.mrb[20].mxu0 %vm331_vm15, %v871_v35  ;;  %2348 = vmatprep.subr.bf16.mxu1 %v2774_v1 }
 0x953   :  { %2355 = vmatpush3.bf16.msra.mxu0 %v3022_v57  ;;  %2358 = vmatprep.mubr.msk.bf16.mxu0 %vm2775_vm1, %v2774_v1 }
 0x954   :  { %2356 = vmatprep.subr.bf16.mxu0 %v2774_v1 }
 0x955   :  { %2349 = vmatpush3.bf16.msra.mxu1 %v3018_v56 }
 0x956   :  { %2362 = vmatprep.subr.bf16.mxu1 %v2774_v1 }
 0x957   :  { %2357 = vmatpush3.bf16.msra.mxu0 %v3027_v58 }
 0x958   :  { %2370 = vmatprep.subr.bf16.mxu0 %v2774_v1 }
 0xa1d   :  { %v863_v16 = vpop.f32.mrb[16].mxu0 }
 0xa1e   :  { %v2328_v37 = vpop.f32.mrb[17].mxu0 }
 0xa1f   :  { %v866_v38 = vpop.f32.mrb[18].mxu0 }
 0xa20   :  { %v2329_v39 = vpop.f32.mrb[19].mxu0 }
 0xa23   :  { %v909_v40 = vpop.f32.mrb[20].mxu1 }
 0xa24   :  { %v910_v41 = vadd.f32 %v909_v40, %v863_v16  ;;  %v2336_v43 = vpop.f32.mrb[21].mxu1 }
 0xa25   :  { %v912_v44 = vpop.f32.mrb[22].mxu1  ;;  %v980_v45 = vpop.f32.mrb[20].mxu0 }
 0xa26   :  { %v915_v36 = vadd.f32 %v3085_v25, %v910_v41  ;;  %v986_v46 = vadd.f32 %v3073_v19, %v980_v45  ;;  %v2337_v47 = vpop.f32.mrb[23].mxu1  ;;  %v2344_v48 = vpop.f32.mrb[21].mxu0 }
 0xa27   :  { %v983_v49 = vpop.f32.mrb[22].mxu0 }
 0xa28   :  { %v2111_v51 = vmul.f32 -1.442695, %v915_v36  ;;  %v2113_v52 = vmul.f32 -1.442695, %v986_v46  ;;  %v2345_v53 = vpop.f32.mrb[23].mxu0 }
 0xa2a   :  { %2553 = vpow2.f32 %v2111_v51 }
 0xa2b   :  { %2555 = vpow2.f32 %v2113_v52 }
 0xa2c   :  { %2557 = vtanh.f32 %v915_v36 }
 0xa2d   :  { %2559 = vtanh.f32 %v986_v46 }
 0xa34   :  { %v2554_v54 = vpop.eup %2553 }
 0xa35   :  { %v2556_v20 = vpop.eup %2555  ;;  %v919_v59 = vadd.f32 1.0, %v2554_v54 }
 0xa36   :  { %v990_v60 = vadd.f32 1.0, %v2556_v20  ;;  %v2558_v63 = vpop.eup %2557 }
 0xa37   :  { %2561 = vrcp.f32 %v919_v59  ;;  %v2560_v2 = vpop.eup %2559 }
 0xa38   :  { %2563 = vrcp.f32 %v990_v60 }
 0xa41   :  { %v2562_v4 = vpop.eup %2561 }
 0xa42   :  { %v2564_v19 = vpop.eup %2563  ;;  %v923_v6 = vsel %vm2994_vm8, %v2558_v63, %v2562_v4 }
 0xa43   :  { %v994_v8 = vsel %vm2994_vm8, %v2560_v2, %v2564_v19  ;;  %926 = vrot.lane.b32.xlu1 %v923_v6, %s2769_s25  ;;  %v924_v61 = vmul.f32 %v923_v6, %v3241_v7 }
 0xa44   :  { %997 = vrot.lane.b32.xlu0 %v994_v8, %s2769_s25  ;;  %v995_v5 = vmul.f32 %v994_v8, %v3247_v28 }
 0xab5   :  { %v927_v10 = vpop.permute.xlu1 %926 }
 0xab6   :  { %v998_v12 = vpop.permute.xlu0 %997  ;;  %v929_v18 = vmul.f32 %v927_v10, %v923_v6 }
 0xab7   :  { %v1000_v26 = vmul.f32 %v998_v12, %v994_v8 }
 0xab8   :  { %931 = vrot.lane.b32.xlu1 %v929_v18, %s2776_s11 }
 0xab9   :  { %1002 = vrot.lane.b32.xlu0 %v1000_v26, %s2776_s11 }
 0xabc   :  { %1014 = vperm.xlu1 %2502, %v1012_v29  }
 0xb2a   :  { %v932_v31 = vpop.permute.xlu1 %931 }
 0xb2b   :  { %v1003_v32 = vpop.permute.xlu0 %1002  ;;  %v3251_v17 = vadd.f32 %v932_v31, %v924_v61 }
 0xb2c   :  { %v3253_v34 = vadd.f32 %v1003_v32, %v995_v5  ;;  %v1210_v32 = vsel %vm1141_vm7, 1, %v2773_v0 }
 0xb2d   :  { %2565 = vtanh.f32 %v3251_v17 }
 0xb2e   :  { %2567 = vtanh.f32 %v3253_v34 }
 0xb37   :  { %v2566_v50 = vpop.eup %2565 }
 0xb38   :  { %v2568_v9 = vpop.eup %2567  ;;  %937 = vrot.lane.b32.xlu0 %v2566_v50, %s2769_s25  ;;  %v3315_v50 = vsel %vm818_vm4, %v3251_v17, %v3241_v7 }
 0xb39   :  { %1008 = vrot.lane.b32.xlu1 %v2568_v9, %s2769_s25 }
 0xb3b   :  { %v3259_v13 = vpop.permute.xlu1 %1014 }
 0xb3c   :  { %vm1016_vm6 = vcmp.eq.s32.totalorder %v3259_v13, 1 }
 0xb3d   :  { %v3325_v3 = vsel %vm1016_vm6, %v3253_v34, %v3247_v28 }
 0xbaa   :  { %v938_v15 = vpop.permute.xlu0 %937 }
 0xbab   :  { %v1009_v27 = vpop.permute.xlu1 %1008  ;;  %v940_v35 = vmul.f32 %v938_v15, %v923_v6 }
 0xbac   :  { %v1011_v16 = vmul.f32 %v1009_v27, %v994_v8 }
 0xbad   :  { %v3265_v37 = vsel %vm818_vm4, %v940_v35, %v3188_v62 }
 0xbae   :  { %v3270_v38 = vsel %vm1016_vm6, %v1011_v16, %v3199_v33  ;;  %v1020_v39 = vpack.c.bf16 %v3265_v37, %v3265_v37 }
 0xbaf   :  { %v1019_v40 = vpack.c.bf16 %v3270_v38, %v3270_v38 }
 0xbb0   :  { %1022 = vrot.lane.b32.xlu0 %v1020_v39, %s2776_s11 }
 0xbb1   :  { %1068 = vrot.lane.b32.xlu1 %v1019_v40, %s2776_s11 }
 0xc22   :  { %v1023_v41 = vpop.permute.xlu0 %1022 }
 0xc23   :  { %v1069_v43 = vpop.permute.xlu1 %1068  ;;  %2351 = vmatmul.mubr.msk.bf16.vlgmr.msra.gmra.mrb[24].mxu1 %vm331_vm15, %v1023_v41 }
 0xc24   :  { %2359 = vmatmul.mubr.msk.bf16.vlgmr.msra.gmra.mrb[24].mxu0 %vm331_vm15, %v1069_v43  ;;  %2363 = vmatpush3.bf16.msra.mxu1 %v2934_v11 }
 0xc25   :  { %2364 = vmatprep.subr.bf16.mxu1 %v2774_v1  ;;  %2366 = vmatprep.mubr.msk.bf16.mxu1 %vm2775_vm1, %v2774_v1 }
 0xc26   :  { %2371 = vmatpush3.bf16.msra.mxu0 %v3015_v55  ;;  %2374 = vmatprep.mubr.msk.bf16.mxu0 %vm2775_vm1, %v2774_v1 }
 0xc27   :  { %2372 = vmatprep.subr.bf16.mxu0 %v2774_v1 }
 0xc28   :  { %2365 = vmatpush3.bf16.msra.mxu1 %v2947_v14 }
 0xc29   :  { %2378 = vmatprep.subr.bf16.mxu1 %v2774_v1 }
 0xc2a   :  { %2373 = vmatpush3.bf16.msra.mxu0 %v3018_v56 }
 0xc2b   :  { %2367 = vmatmul.mubr.msk.bf16.vlgmr.msra.gmra.mrb[28].mxu1 %vm331_vm15, %v1069_v43  ;;  %2386 = vmatprep.subr.bf16.mxu0 %v2774_v1 }
 0xc2c   :  { %2379 = vmatpush3.bf16.msra.mxu1 %v3022_v57  ;;  %2382 = vmatprep.mubr.msk.bf16.mxu1 %vm2775_vm1, %v2774_v1 }
 0xc2d   :  { %2380 = vmatprep.subr.bf16.mxu1 %v2774_v1 }
 0xc30   :  { %2381 = vmatpush3.bf16.msra.mxu1 %v3027_v58 }
 0xc31   :  { %2394 = vmatprep.subr.bf16.mxu1 %v2774_v1 }
 0xcf6   :  { %v1061_v62 = vpop.f32.mrb[24].mxu1 }
 0xcf7   :  { %v1107_v33 = vpop.f32.mrb[24].mxu0  ;;  %v2352_v44 = vpop.f32.mrb[25].mxu1 }
 0xcf8   :  { %v1108_v45 = vadd.f32 %v1107_v33, %v1061_v62  ;;  %v2360_v36 = vpop.f32.mrb[25].mxu0  ;;  %v1064_v46 = vpop.f32.mrb[26].mxu1 }
 0xcf9   :  { %v1110_v47 = vpop.f32.mrb[26].mxu0  ;;  %v2353_v48 = vpop.f32.mrb[27].mxu1 }
 0xcfa   :  { %v1113_v49 = vadd.f32 %v3085_v25, %v1108_v45  ;;  %v2361_v51 = vpop.f32.mrb[27].mxu0 }
 0xcfc   :  { %v2116_v52 = vmul.f32 -1.442695, %v1113_v49 }
 0xcfe   :  { %2569 = vpow2.f32 %v2116_v52  ;;  %v1178_v53 = vpop.f32.mrb[28].mxu1 }
 0xcff   :  { %v1184_v54 = vadd.f32 %v1178_v53, %v3079_v22  ;;  %v2368_v20 = vpop.f32.mrb[29].mxu1 }
 0xd00   :  { %v1181_v59 = vpop.f32.mrb[30].mxu1 }
 0xd01   :  { %v2118_v60 = vmul.f32 -1.442695, %v1184_v54  ;;  %v2369_v63 = vpop.f32.mrb[31].mxu1 }
 0xd03   :  { %2571 = vpow2.f32 %v2118_v60 }
 0xd04   :  { %2573 = vtanh.f32 %v1113_v49 }
 0xd08   :  { %v2570_v2 = vpop.eup %2569 }
 0xd09   :  { %v1117_v4 = vadd.f32 1.0, %v2570_v2 }
 0xd0b   :  { %2575 = vrcp.f32 %v1117_v4 }
 0xd0c   :  { %2577 = vtanh.f32 %v1184_v54 }
 0xd0d   :  { %v2572_v19 = vpop.eup %2571 }
 0xd0e   :  { %v1188_v6 = vadd.f32 1.0, %v2572_v19  ;;  %v2574_v8 = vpop.eup %2573 }
 0xd10   :  { %2579 = vrcp.f32 %v1188_v6 }
 0xd15   :  { %v2576_v10 = vpop.eup %2575 }
 0xd16   :  { %v1121_v12 = vsel %vm2994_vm8, %v2574_v8, %v2576_v10  ;;  %v2578_v22 = vpop.eup %2577 }
 0xd17   :  { %1124 = vrot.lane.b32.xlu0 %v1121_v12, %s2769_s25  ;;  %v1122_v9 = vmul.f32 %v1121_v12, %v3315_v50 }
 0xd1a   :  { %v2580_v18 = vpop.eup %2579 }
 0xd1b   :  { %v1192_v26 = vsel %vm2994_vm8, %v2578_v22, %v2580_v18 }
 0xd1c   :  { %1195 = vrot.lane.b32.xlu1 %v1192_v26, %s2769_s25  ;;  %v1193_v35 = vmul.f32 %v1192_v26, %v3325_v3 }
 0xd89   :  { %v1125_v29 = vpop.permute.xlu0 %1124 }
 0xd8a   :  { %v1127_v61 = vmul.f32 %v1125_v29, %v1121_v12 }
 0xd8c   :  { %1129 = vrot.lane.b32.xlu0 %v1127_v61, %s2776_s11 }
 0xd8e   :  { %v1196_v5 = vpop.permute.xlu1 %1195 }
 0xd8f   :  { %v1198_v31 = vmul.f32 %v1196_v5, %v1192_v26 }
 0xd91   :  { %1200 = vrot.lane.b32.xlu1 %v1198_v31, %s2776_s11  ;;  %v3384_v31 = vld [vmem:[%s3614_s1] sm:$0xff] }
 0xd92   :  { %vm1339_vm10 = vcmp.gt.s32.totalorder %v3384_v31, 5  ;;  %vm1537_vm12 = vcmp.gt.s32.totalorder %v3384_v31, 6  ;;  %vm1735_vm14 = vcmp.gt.s32.totalorder %v3384_v31, 7 }
 0xd95   :  { %1212 = vperm.xlu1 %2502, %v1210_v32  }
 0xdfe   :  { %v1130_v15 = vpop.permute.xlu0 %1129 }
 0xdff   :  { %v3318_v27 = vadd.f32 %v1130_v15, %v1122_v9  ;;  %v1408_v9 = vsel %vm1339_vm10, 1, %v2773_v0 }
 0xe01   :  { %2581 = vtanh.f32 %v3318_v27  ;;  %v3394_v15 = vsel %vm1016_vm6, %v3318_v27, %v3315_v50 }
 0xe03   :  { %v1201_v16 = vpop.permute.xlu1 %1200 }
 0xe04   :  { %v3328_v39 = vadd.f32 %v1201_v16, %v1193_v35 }
 0xe06   :  { %2583 = vtanh.f32 %v3328_v39 }
 0xe0b   :  { %v2582_v30 = vpop.eup %2581 }
 0xe0c   :  { %1135 = vrot.lane.b32.xlu0 %v2582_v30, %s2769_s25 }
 0xe10   :  { %v2584_v7 = vpop.eup %2583 }
 0xe11   :  { %1206 = vrot.lane.b32.xlu0 %v2584_v7, %s2769_s25 }
 0xe14   :  { %v3338_v34 = vpop.permute.xlu1 %1212 }
 0xe15   :  { %vm1214_vm9 = vcmp.eq.s32.totalorder %v3338_v34, 1 }
 0xe16   :  { %v3400_v35 = vsel %vm1214_vm9, %v3328_v39, %v3325_v3 }
 0xe7e   :  { %v1136_v17 = vpop.permute.xlu0 %1135 }
 0xe7f   :  { %v1138_v40 = vmul.f32 %v1136_v17, %v1121_v12 }
 0xe81   :  { %v3336_v28 = vsel %vm1016_vm6, %v1138_v40, %v3265_v37 }
 0xe82   :  { %v1218_v41 = vpack.c.bf16 %v3336_v28, %v3336_v28 }
 0xe83   :  { %v1207_v43 = vpop.permute.xlu0 %1206 }
 0xe84   :  { %1220 = vrot.lane.b32.xlu1 %v1218_v41, %s2776_s11  ;;  %v1209_v62 = vmul.f32 %v1207_v43, %v1192_v26 }
 0xe86   :  { %v3347_v33 = vsel %vm1214_vm9, %v1209_v62, %v3270_v38 }
 0xe87   :  { %v1217_v37 = vpack.c.bf16 %v3347_v33, %v3347_v33 }
 0xe89   :  { %1266 = vrot.lane.b32.xlu0 %v1217_v37, %s2776_s11 }
 0xef6   :  { %v1221_v44 = vpop.permute.xlu1 %1220 }
 0xef7   :  { %2375 = vmatmul.mubr.msk.bf16.vlgmr.msra.gmra.mrb[28].mxu0 %vm331_vm15, %v1221_v44 }
 0xef8   :  { %2387 = vmatpush3.bf16.msra.mxu0 %v2934_v11  ;;  %2390 = vmatprep.mubr.msk.bf16.mxu0 %vm2775_vm1, %v2774_v1 }
 0xef9   :  { %2388 = vmatprep.subr.bf16.mxu0 %v2774_v1 }
 0xefb   :  { %v1267_v45 = vpop.permute.xlu0 %1266 }
 0xefc   :  { %2389 = vmatpush3.bf16.msra.mxu0 %v2947_v14  ;;  %2383 = vmatmul.mubr.msk.bf16.vlgmr.msra.gmra.mrb[32].mxu1 %vm331_vm15, %v1267_v45 }
 0xefd   :  { %2402 = vmatprep.subr.bf16.mxu0 %v2774_v1  ;;  %2395 = vmatpush3.bf16.msra.mxu1 %v3015_v55 }
 0xefe   :  { %2396 = vmatprep.subr.bf16.mxu1 %v2774_v1  ;;  %2398 = vmatprep.mubr.msk.bf16.mxu1 %vm2775_vm1, %v2774_v1 }
 0xeff   :  { %2391 = vmatmul.mubr.msk.bf16.vlgmr.msra.gmra.mrb[32].mxu0 %vm331_vm15, %v1267_v45 }
 0xf00   :  { %2403 = vmatpush3.bf16.msra.mxu0 %v3022_v57  ;;  %2406 = vmatprep.mubr.msk.bf16.mxu0 %vm2775_vm1, %v2774_v1 }
 0xf01   :  { %2404 = vmatprep.subr.bf16.mxu0 %v2774_v1  ;;  %2397 = vmatpush3.bf16.msra.mxu1 %v3018_v56 }
 0xf02   :  { %2410 = vmatprep.subr.bf16.mxu1 %v2774_v1 }
 0xf04   :  { %2405 = vmatpush3.bf16.msra.mxu0 %v3027_v58 }
 0xf05   :  { %2418 = vmatprep.subr.bf16.mxu0 %v2774_v1 }
 0xfca   :  { %v1259_v11 = vpop.f32.mrb[28].mxu0 }
 0xfcb   :  { %v2376_v14 = vpop.f32.mrb[29].mxu0 }
 0xfcc   :  { %v1262_v38 = vpop.f32.mrb[30].mxu0 }
 0xfcd   :  { %v2377_v36 = vpop.f32.mrb[31].mxu0 }
 0xfcf   :  { %v1305_v46 = vpop.f32.mrb[32].mxu1 }
 0xfd0   :  { %v1306_v47 = vadd.f32 %v1305_v46, %v1259_v11  ;;  %v2384_v48 = vpop.f32.mrb[33].mxu1 }
 0xfd1   :  { %v1308_v49 = vpop.f32.mrb[34].mxu1 }
 0xfd2   :  { %v1311_v51 = vadd.f32 %v3085_v25, %v1306_v47  ;;  %v1376_v52 = vpop.f32.mrb[32].mxu0  ;;  %v2385_v53 = vpop.f32.mrb[35].mxu1 }
 0xfd3   :  { %v1382_v54 = vadd.f32 %v3077_v21, %v1376_v52  ;;  %v2392_v20 = vpop.f32.mrb[33].mxu0 }
 0xfd4   :  { %v2121_v59 = vmul.f32 -1.442695, %v1311_v51  ;;  %v1379_v60 = vpop.f32.mrb[34].mxu0 }
 0xfd5   :  { %v2123_v63 = vmul.f32 -1.442695, %v1382_v54  ;;  %v2393_v2 = vpop.f32.mrb[35].mxu0 }
 0xfd6   :  { %2585 = vpow2.f32 %v2121_v59 }
 0xfd7   :  { %2587 = vpow2.f32 %v2123_v63 }
 0xfd8   :  { %2589 = vtanh.f32 %v1311_v51 }
 0xfd9   :  { %2591 = vtanh.f32 %v1382_v54 }
 0xfe0   :  { %v2586_v4 = vpop.eup %2585 }
 0xfe1   :  { %v2588_v19 = vpop.eup %2587  ;;  %v1315_v6 = vadd.f32 1.0, %v2586_v4 }
 0xfe2   :  { %v1386_v8 = vadd.f32 1.0, %v2588_v19  ;;  %v2590_v10 = vpop.eup %2589 }
 0xfe3   :  { %2593 = vrcp.f32 %v1315_v6  ;;  %v2592_v12 = vpop.eup %2591 }
 0xfe4   :  { %2595 = vrcp.f32 %v1386_v8 }
 0xfed   :  { %v2594_v22 = vpop.eup %2593 }
 0xfee   :  { %v2596_v18 = vpop.eup %2595  ;;  %v1319_v21 = vsel %vm2994_vm8, %v2590_v10, %v2594_v22 }
 0xfef   :  { %v1390_v26 = vsel %vm2994_vm8, %v2592_v12, %v2596_v18  ;;  %1322 = vrot.lane.b32.xlu1 %v1319_v21, %s2769_s25  ;;  %v1320_v16 = vmul.f32 %v1319_v21, %v3394_v15 }
 0xff0   :  { %1393 = vrot.lane.b32.xlu0 %v1390_v26, %s2769_s25  ;;  %v1391_v30 = vmul.f32 %v1390_v26, %v3400_v35 }
0x1061   :  { %v1323_v29 = vpop.permute.xlu1 %1322 }
0x1062   :  { %v1394_v61 = vpop.permute.xlu0 %1393  ;;  %v1325_v5 = vmul.f32 %v1323_v29, %v1319_v21 }
0x1063   :  { %v1396_v32 = vmul.f32 %v1394_v61, %v1390_v26  ;;  %v1606_v61 = vsel %vm1537_vm12, 1, %v2773_v0 }
0x1064   :  { %1327 = vrot.lane.b32.xlu1 %v1325_v5, %s2776_s11 }
0x1065   :  { %1398 = vrot.lane.b32.xlu0 %v1396_v32, %s2776_s11 }
0x1068   :  { %1410 = vperm.xlu1 %2502, %v1408_v9  }
0x10d6   :  { %v1328_v7 = vpop.permute.xlu1 %1327 }
0x10d7   :  { %v1399_v17 = vpop.permute.xlu0 %1398  ;;  %v3404_v40 = vadd.f32 %v1328_v7, %v1320_v16 }
0x10d8   :  { %v3406_v41 = vadd.f32 %v1399_v17, %v1391_v30 }
0x10d9   :  { %2597 = vtanh.f32 %v3404_v40  ;;  %v3478_v5 = vsel %vm1214_vm9, %v3404_v40, %v3394_v15 }
0x10da   :  { %2599 = vtanh.f32 %v3406_v41 }
0x10e3   :  { %v2598_v13 = vpop.eup %2597 }
0x10e4   :  { %v2600_v50 = vpop.eup %2599  ;;  %1333 = vrot.lane.b32.xlu0 %v2598_v13, %s2769_s25 }
0x10e5   :  { %1404 = vrot.lane.b32.xlu1 %v2600_v50, %s2769_s25 }
0x10e7   :  { %v3412_v27 = vpop.permute.xlu1 %1410 }
0x10e8   :  { %vm1412_vm11 = vcmp.eq.s32.totalorder %v3412_v27, 1 }
0x10e9   :  { %v3488_v30 = vsel %vm1412_vm11, %v3406_v41, %v3400_v35 }
0x1156   :  { %v1334_v3 = vpop.permute.xlu0 %1333 }
0x1157   :  { %v1405_v39 = vpop.permute.xlu1 %1404  ;;  %v1336_v43 = vmul.f32 %v1334_v3, %v1319_v21 }
0x1158   :  { %v1407_v62 = vmul.f32 %v1405_v39, %v1390_v26 }
0x1159   :  { %v3418_v37 = vsel %vm1214_vm9, %v1336_v43, %v3336_v28  ;;  %v3436_v28 = vld [vmem:[%s3616_s3] sm:$0xff]  }
0x115a   :  { %v3423_v44 = vsel %vm1412_vm11, %v1407_v62, %v3347_v33  ;;  %v1416_v45 = vpack.c.bf16 %v3418_v37, %v3418_v37  ;;  %v3449_v33 = vld [vmem:[%s3616_s3 + $0x8] sm:$0xff]  }
0x115b   :  { %v1415_v11 = vpack.c.bf16 %v3423_v44, %v3423_v44 }
0x115c   :  { %1418 = vrot.lane.b32.xlu0 %v1416_v45, %s2776_s11 }
0x115d   :  { %1464 = vrot.lane.b32.xlu1 %v1415_v11, %s2776_s11 }
0x11ce   :  { %v1419_v14 = vpop.permute.xlu0 %1418 }
0x11cf   :  { %v1465_v38 = vpop.permute.xlu1 %1464  ;;  %2399 = vmatmul.mubr.msk.bf16.vlgmr.msra.gmra.mrb[36].mxu1 %vm331_vm15, %v1419_v14  ;;  %v2645_v14 = vld [vmem:[#allocation3] sm:$0xff]  }
0x11d0   :  { %2407 = vmatmul.mubr.msk.bf16.vlgmr.msra.gmra.mrb[36].mxu0 %vm331_vm15, %v1465_v38  ;;  %2411 = vmatpush3.bf16.msra.mxu1 %v3436_v28 }
0x11d1   :  { %2412 = vmatprep.subr.bf16.mxu1 %v2774_v1  ;;  %2414 = vmatprep.mubr.msk.bf16.mxu1 %vm2775_vm1, %v2774_v1 }
0x11d2   :  { %2419 = vmatpush3.bf16.msra.mxu0 %v3015_v55  ;;  %2422 = vmatprep.mubr.msk.bf16.mxu0 %vm2775_vm1, %v2774_v1 }
0x11d3   :  { %2420 = vmatprep.subr.bf16.mxu0 %v2774_v1 }
0x11d4   :  { %2413 = vmatpush3.bf16.msra.mxu1 %v3449_v33 }
0x11d5   :  { %2426 = vmatprep.subr.bf16.mxu1 %v2774_v1 }
0x11d6   :  { %2421 = vmatpush3.bf16.msra.mxu0 %v3018_v56 }
0x11d7   :  { %2415 = vmatmul.mubr.msk.bf16.vlgmr.msra.gmra.mrb[40].mxu1 %vm331_vm15, %v1465_v38  ;;  %2434 = vmatprep.subr.bf16.mxu0 %v2774_v1  ;;  %v2646_v38 = vld [vmem:[#allocation6 + $0x8] sm:$0xff]  }
0x11d8   :  { %2427 = vmatpush3.bf16.msra.mxu1 %v3022_v57  ;;  %2430 = vmatprep.mubr.msk.bf16.mxu1 %vm2775_vm1, %v2774_v1 }
0x11d9   :  { %2428 = vmatprep.subr.bf16.mxu1 %v2774_v1 }
0x11dc   :  { %2429 = vmatpush3.bf16.msra.mxu1 %v3027_v58 }
0x11dd   :  { %2442 = vmatprep.subr.bf16.mxu1 %v2774_v1 }
0x12a2   :  { %v1457_v55 = vpop.f32.mrb[36].mxu1 }
0x12a3   :  { %v1503_v36 = vpop.f32.mrb[36].mxu0  ;;  %v2400_v46 = vpop.f32.mrb[37].mxu1 }
0x12a4   :  { %v1504_v47 = vadd.f32 %v1503_v36, %v1457_v55  ;;  %v2408_v56 = vpop.f32.mrb[37].mxu0  ;;  %v1460_v48 = vpop.f32.mrb[38].mxu1 }
0x12a5   :  { %v1506_v49 = vpop.f32.mrb[38].mxu0  ;;  %v2401_v51 = vpop.f32.mrb[39].mxu1 }
0x12a6   :  { %v1509_v52 = vadd.f32 %v3085_v25, %v1504_v47  ;;  %v2409_v57 = vpop.f32.mrb[39].mxu0  ;;  %v3532_v51 = vld [vmem:[#allocation8] ss:$0 sm:$0xff] }
0x12a8   :  { %v2126_v53 = vmul.f32 -1.442695, %v1509_v52 }
0x12aa   :  { %2601 = vpow2.f32 %v2126_v53  ;;  %v1574_v54 = vpop.f32.mrb[40].mxu1 }
0x12ab   :  { %v1580_v20 = vadd.f32 %v1574_v54, %v3083_v24  ;;  %v2416_v59 = vpop.f32.mrb[41].mxu1 }
0x12ac   :  { %v1577_v58 = vpop.f32.mrb[42].mxu1 }
0x12ad   :  { %v2128_v60 = vmul.f32 -1.442695, %v1580_v20  ;;  %v2417_v63 = vpop.f32.mrb[43].mxu1 }
0x12af   :  { %2603 = vpow2.f32 %v2128_v60 }
0x12b0   :  { %2605 = vtanh.f32 %v1509_v52 }
0x12b4   :  { %v2602_v2 = vpop.eup %2601 }
0x12b5   :  { %v1513_v4 = vadd.f32 1.0, %v2602_v2 }
0x12b7   :  { %2607 = vrcp.f32 %v1513_v4 }
0x12b8   :  { %2609 = vtanh.f32 %v1580_v20 }
0x12b9   :  { %v2604_v19 = vpop.eup %2603 }
0x12ba   :  { %v1584_v6 = vadd.f32 1.0, %v2604_v19  ;;  %v2606_v25 = vpop.eup %2605 }
0x12bc   :  { %2611 = vrcp.f32 %v1584_v6 }
0x12c1   :  { %v2608_v8 = vpop.eup %2607 }
0x12c2   :  { %v1517_v10 = vsel %vm2994_vm8, %v2606_v25, %v2608_v8  ;;  %v2610_v24 = vpop.eup %2609 }
0x12c3   :  { %1520 = vrot.lane.b32.xlu0 %v1517_v10, %s2769_s25  ;;  %v1518_v32 = vmul.f32 %v1517_v10, %v3478_v5 }
0x12c6   :  { %v2612_v12 = vpop.eup %2611 }
0x12c7   :  { %v1588_v22 = vsel %vm2994_vm8, %v2610_v24, %v2612_v12 }
0x12c8   :  { %1591 = vrot.lane.b32.xlu1 %v1588_v22, %s2769_s25  ;;  %v1589_v7 = vmul.f32 %v1588_v22, %v3488_v30 }
0x1335   :  { %v1521_v18 = vpop.permute.xlu0 %1520 }
0x1336   :  { %v1523_v21 = vmul.f32 %v1521_v18, %v1517_v10 }
0x1338   :  { %1525 = vrot.lane.b32.xlu0 %v1523_v21, %s2776_s11 }
0x133a   :  { %v1592_v26 = vpop.permute.xlu1 %1591 }
0x133b   :  { %v1594_v29 = vmul.f32 %v1592_v26, %v1588_v22 }
0x133d   :  { %1596 = vrot.lane.b32.xlu1 %v1594_v29, %s2776_s11  ;;  %v1804_v29 = vsel %vm1735_vm14, 1, %v2773_v0 }
0x1341   :  { %1608 = vperm.xlu1 %2502, %v1606_v61  }
0x13aa   :  { %v1526_v9 = vpop.permute.xlu0 %1525 }
0x13ab   :  { %v3481_v16 = vadd.f32 %v1526_v9, %v1518_v32 }
0x13ad   :  { %2613 = vtanh.f32 %v3481_v16  ;;  %v3550_v61 = vsel %vm1412_vm11, %v3481_v16, %v3478_v5 }
0x13af   :  { %v1597_v17 = vpop.permute.xlu1 %1596 }
0x13b0   :  { %v3491_v13 = vadd.f32 %v1597_v17, %v1589_v7 }
0x13b2   :  { %2615 = vtanh.f32 %v3491_v13 }
0x13b7   :  { %v2614_v34 = vpop.eup %2613 }
0x13b8   :  { %1531 = vrot.lane.b32.xlu0 %v2614_v34, %s2769_s25 }
0x13bc   :  { %v2616_v15 = vpop.eup %2615 }
0x13bd   :  { %1602 = vrot.lane.b32.xlu0 %v2616_v15, %s2769_s25 }
0x13c0   :  { %v3501_v41 = vpop.permute.xlu1 %1608 }
0x13c1   :  { %vm1610_vm13 = vcmp.eq.s32.totalorder %v3501_v41, 1 }
0x13c2   :  { %v1612_v32 = vsel %vm1610_vm13, %v3491_v13, %v3488_v30 }
0x142a   :  { %v1532_v40 = vpop.permute.xlu0 %1531 }
0x142b   :  { %v1534_v50 = vmul.f32 %v1532_v40, %v1517_v10 }
0x142d   :  { %v3499_v35 = vsel %vm1412_vm11, %v1534_v50, %v3418_v37 }
0x142e   :  { %v1614_v3 = vpack.c.bf16 %v3499_v35, %v3499_v35 }
0x142f   :  { %v1603_v39 = vpop.permute.xlu0 %1602 }
0x1430   :  { %1616 = vrot.lane.b32.xlu1 %v1614_v3, %s2776_s11  ;;  %v1605_v43 = vmul.f32 %v1603_v39, %v1588_v22 }
0x1432   :  { %v3510_v62 = vsel %vm1610_vm13, %v1605_v43, %v3423_v44  ;;  %v2644_v44 = vld [vmem:[#allocation6] sm:$0xff]  }
0x1433   :  { %v1613_v37 = vpack.c.bf16 %v3510_v62, %v3510_v62 }
0x1435   :  { %1662 = vrot.lane.b32.xlu0 %v1613_v37, %s2776_s11  ;;  %v2509_v37 = vld [vmem:[%s3620_s7] sm:$0xff]  }
0x14a2   :  { %v1617_v45 = vpop.permute.xlu1 %1616 }
0x14a3   :  { %2423 = vmatmul.mubr.msk.bf16.vlgmr.msra.gmra.mrb[40].mxu0 %vm331_vm15, %v1617_v45 }
0x14a4   :  { %2435 = vmatpush3.bf16.msra.mxu0 %v3436_v28  ;;  %2438 = vmatprep.mubr.msk.bf16.mxu0 %vm2775_vm1, %v2774_v1  ;;  %v2647_v28 = vld [vmem:[#allocation3 + $0x8] sm:$0xff]  }
0x14a5   :  { %2436 = vmatprep.subr.bf16.mxu0 %v2774_v1 }
0x14a7   :  { %v1663_v11 = vpop.permute.xlu0 %1662 }
0x14a8   :  { %2437 = vmatpush3.bf16.msra.mxu0 %v3449_v33  ;;  %2431 = vmatmul.mubr.msk.bf16.vlgmr.msra.gmra.mrb[44].mxu1 %vm331_vm15, %v1663_v11 }
0x14a9   :  { %2450 = vmatprep.subr.bf16.mxu0 %v2774_v1  ;;  %2443 = vmatpush3.bf16.msra.mxu1 %v2644_v44 }
0x14aa   :  { %2444 = vmatprep.subr.bf16.mxu1 %v2774_v1  ;;  %2446 = vmatprep.mubr.msk.bf16.mxu1 %vm2775_vm1, %v2774_v1 }
0x14ab   :  { %2439 = vmatmul.mubr.msk.bf16.vlgmr.msra.gmra.mrb[44].mxu0 %vm331_vm15, %v1663_v11 }
0x14ac   :  { %2451 = vmatpush3.bf16.msra.mxu0 %v2645_v14  ;;  %2454 = vmatprep.mubr.msk.bf16.mxu0 %vm2775_vm1, %v2774_v1 }
0x14ad   :  { %2452 = vmatprep.subr.bf16.mxu0 %v2774_v1  ;;  %2445 = vmatpush3.bf16.msra.mxu1 %v2646_v38 }
0x14ae   :  { %2458 = vmatprep.subr.bf16.mxu1 %v2774_v1 }
0x14b0   :  { %2453 = vmatpush3.bf16.msra.mxu0 %v2647_v28 }
0x14b1   :  { %2466 = vmatprep.subr.bf16.mxu0 %v2774_v1 }
0x1576   :  { %v1655_v33 = vpop.f32.mrb[40].mxu0 }
0x1577   :  { %v2424_v55 = vpop.f32.mrb[41].mxu0 }
0x1578   :  { %v1658_v36 = vpop.f32.mrb[42].mxu0 }
0x1579   :  { %v2425_v46 = vpop.f32.mrb[43].mxu0 }
0x157b   :  { %v1701_v47 = vpop.f32.mrb[44].mxu1 }
0x157c   :  { %v1702_v56 = vadd.f32 %v1701_v47, %v1655_v33  ;;  %v2432_v48 = vpop.f32.mrb[45].mxu1 }
0x157d   :  { %v1704_v49 = vpop.f32.mrb[46].mxu1 }
0x157e   :  { %v1707_v52 = vadd.f32 %v3532_v51, %v1702_v56  ;;  %v1772_v57 = vpop.f32.mrb[44].mxu0  ;;  %v2433_v53 = vpop.f32.mrb[47].mxu1 }
0x157f   :  { %v1778_v54 = vadd.f32 %v3081_v23, %v1772_v57  ;;  %v2440_v20 = vpop.f32.mrb[45].mxu0 }
0x1580   :  { %v2131_v59 = vmul.f32 -1.442695, %v1707_v52  ;;  %v1775_v58 = vpop.f32.mrb[46].mxu0 }
0x1581   :  { %v2133_v60 = vmul.f32 -1.442695, %v1778_v54  ;;  %v2441_v63 = vpop.f32.mrb[47].mxu0 }
0x1582   :  { %2617 = vpow2.f32 %v2131_v59 }
0x1583   :  { %2619 = vpow2.f32 %v2133_v60 }
0x1584   :  { %2621 = vtanh.f32 %v1707_v52 }
0x1585   :  { %2623 = vtanh.f32 %v1778_v54 }
0x158c   :  { %v2618_v2 = vpop.eup %2617 }
0x158d   :  { %v2620_v4 = vpop.eup %2619  ;;  %v1711_v19 = vadd.f32 1.0, %v2618_v2 }
0x158e   :  { %v1782_v6 = vadd.f32 1.0, %v2620_v4  ;;  %v2622_v25 = vpop.eup %2621 }
0x158f   :  { %2625 = vrcp.f32 %v1711_v19  ;;  %v2624_v8 = vpop.eup %2623 }
0x1590   :  { %2627 = vrcp.f32 %v1782_v6  ;;  %v2511_v6 = vld [vmem:[#allocation9] sm:$0xff]  }
0x1599   :  { %v2626_v10 = vpop.eup %2625 }
0x159a   :  { %v2628_v24 = vpop.eup %2627  ;;  %v1715_v23 = vsel %vm2994_vm8, %v2622_v25, %v2626_v10  ;;  %v2512_v25 = vld [vmem:[#allocation9 + $0x8] sm:$0xff]  }
0x159b   :  { %v1786_v12 = vsel %vm2994_vm8, %v2624_v8, %v2628_v24  ;;  %1718 = vrot.lane.b32.xlu1 %v1715_v23, %s2769_s25  ;;  %v1716_v31 = vmul.f32 %v1715_v23, %v3550_v61 }
0x159c   :  { %1789 = vrot.lane.b32.xlu0 %v1786_v12, %s2769_s25  ;;  %v1787_v9 = vmul.f32 %v1786_v12, %v1612_v32 }
0x160d   :  { %v1719_v22 = vpop.permute.xlu1 %1718 }
0x160e   :  { %v1790_v18 = vpop.permute.xlu0 %1789  ;;  %v1721_v21 = vmul.f32 %v1719_v22, %v1715_v23 }
0x160f   :  { %v1792_v26 = vmul.f32 %v1790_v18, %v1786_v12 }
0x1610   :  { %1723 = vrot.lane.b32.xlu1 %v1721_v21, %s2776_s11 }
0x1611   :  { %1794 = vrot.lane.b32.xlu0 %v1792_v26, %s2776_s11 }
0x1614   :  { %1806 = vperm.xlu1 %2502, %v1804_v29  }
0x1682   :  { %v1724_v7 = vpop.permute.xlu1 %1723 }
0x1683   :  { %v1795_v17 = vpop.permute.xlu0 %1794  ;;  %v1726_v34 = vadd.f32 %v1724_v7, %v1716_v31 }
0x1684   :  { %v1797_v15 = vadd.f32 %v1795_v17, %v1787_v9 }
0x1685   :  { %2629 = vtanh.f32 %v1726_v34  ;;  %v1734_v63 = vsel %vm1610_vm13, %v1726_v34, %v3550_v61 }
0x1686   :  { %2631 = vtanh.f32 %v1797_v15 }
0x168f   :  { %v2630_v0 = vpop.eup %2629 }
0x1690   :  { %v2632_v40 = vpop.eup %2631  ;;  %1729 = vrot.lane.b32.xlu0 %v2630_v0, %s2769_s25 }
0x1691   :  { %1800 = vrot.lane.b32.xlu1 %v2632_v40, %s2769_s25 }
0x1693   :  { %v3559_v27 = vpop.permute.xlu1 %1806 }
0x1694   :  { %vm1808_vm0 = vcmp.eq.s32.totalorder %v3559_v27, 1 }
0x1702   :  { %v1730_v5 = vpop.permute.xlu0 %1729 }
0x1703   :  { %v1801_v16 = vpop.permute.xlu1 %1800  ;;  %v1732_v30 = vmul.f32 %v1730_v5, %v1715_v23 }
0x1704   :  { %v1803_v13 = vmul.f32 %v1801_v16, %v1786_v12 }
0x1705   :  { %v1733_v50 = vsel %vm1610_vm13, %v1732_v30, %v3499_v35  ;;  %v2510_v35 = vld [vmem:[%s3620_s7 + $0x8] sm:$0xff]  }
0x1706   :  { %v1809_v3 = vsel %vm1808_vm0, %v1803_v13, %v3510_v62  ;;  %v1811_v39 = vpack.c.bf16 %v1733_v50, %v1733_v50 }
0x1707   :  { %v1810_v43 = vpack.c.bf16 %v1809_v3, %v1809_v3 }
0x1708   :  { %1813 = vrot.lane.b32.xlu0 %v1811_v39, %s2776_s11 }
0x1709   :  { %1859 = vrot.lane.b32.xlu1 %v1810_v43, %s2776_s11 }
0x177a   :  { %v1814_v45 = vpop.permute.xlu0 %1813 }
0x177b   :  { %v1860_v11 = vpop.permute.xlu1 %1859  ;;  %2447 = vmatmul.mubr.msk.bf16.vlgmr.msra.gmra.mrb[48].mxu1 %vm331_vm15, %v1814_v45 }
0x177c   :  { %2455 = vmatmul.mubr.msk.bf16.vlgmr.msra.gmra.mrb[48].mxu0 %vm331_vm15, %v1860_v11  ;;  %2462 = vmatprep.mubr.msk.bf16.mxu1 %vm2775_vm1, %v2774_v1 }
0x177d   :  { %2467 = vmatpush3.bf16.msra.mxu0 %v2509_v37  ;;  %2470 = vmatprep.mubr.msk.bf16.mxu0 %vm2775_vm1, %v2774_v1 }
0x177e   :  { %2468 = vmatprep.subr.bf16.mxu0 %v2774_v1  ;;  %2459 = vmatpush3.bf16.msra.mxu1 %v2511_v6 }
0x177f   :  { %2460 = vmatprep.subr.bf16.mxu1 %v2774_v1  ;;  %v2143_v1 = vld [vmem:[%s3622_s9] ss:$0 sm:$0xff] }
0x1781   :  { %2469 = vmatpush3.bf16.msra.mxu0 %v2510_v35 }
0x1782   :  { %2461 = vmatpush3.bf16.msra.mxu1 %v2512_v25 }
0x1784   :  { %2471 = vmatmul.mubr.msk.bf16.vlgmr.msra.gmra.mrb[52].mxu0 %vm331_vm15, %v1860_v11 }
0x184e   :  { %v1852_v62 = vpop.f32.mrb[48].mxu1 }
0x184f   :  { %v1898_v44 = vpop.f32.mrb[48].mxu0  ;;  %v2448_v14 = vpop.f32.mrb[49].mxu1 }
0x1850   :  { %v1899_v38 = vadd.f32 %v1898_v44, %v1852_v62  ;;  %v2456_v28 = vpop.f32.mrb[49].mxu0  ;;  %v1855_v33 = vpop.f32.mrb[50].mxu1 }
0x1851   :  { %v1901_v55 = vpop.f32.mrb[50].mxu0  ;;  %v2449_v36 = vpop.f32.mrb[51].mxu1 }
0x1852   :  { %v1904_v46 = vadd.f32 %v3532_v51, %v1899_v38  ;;  %v2457_v47 = vpop.f32.mrb[51].mxu0 }
0x1854   :  { %v2136_v56 = vmul.f32 -1.442695, %v1904_v46 }
0x1856   :  { %2633 = vpow2.f32 %v2136_v56 }
0x1857   :  { %v2044_v48 = vpop.f32.mrb[52].mxu0  ;;  %2635 = vtanh.f32 %v1904_v46 }
0x1858   :  { %v2472_v49 = vpop.f32.mrb[53].mxu0 }
0x1859   :  { %v2047_v52 = vpop.f32.mrb[54].mxu0 }
0x185a   :  { %v2473_v57 = vpop.f32.mrb[55].mxu0 }
0x1860   :  { %v2634_v53 = vpop.eup %2633 }
0x1861   :  { %v1908_v54 = vadd.f32 1.0, %v2634_v53  ;;  %v2636_v20 = vpop.eup %2635 }
0x1863   :  { %2637 = vrcp.f32 %v1908_v54 }
0x186d   :  { %v2638_v59 = vpop.eup %2637 }
0x186e   :  { %v1912_v58 = vsel %vm2994_vm8, %v2636_v20, %v2638_v59 }
0x186f   :  { %1915 = vrot.lane.b32.xlu0 %v1912_v58, %s2769_s25  ;;  %v1913_v2 = vmul.f32 %v1912_v58, %v1734_v63 }
0x18e1   :  { %v1916_v60 = vpop.permute.xlu0 %1915 }
0x18e2   :  { %v1918_v51 = vmul.f32 %v1916_v60, %v1912_v58 }
0x18e4   :  { %1920 = vrot.lane.b32.xlu1 %v1918_v51, %s2776_s11 }
0x1956   :  { %v1921_v4 = vpop.permute.xlu1 %1920 }
0x1957   :  { %v1923_v19 = vadd.f32 %v1921_v4, %v1913_v2 }
0x1959   :  { %2639 = vtanh.f32 %v1923_v19 }
0x1963   :  { %v2640_v42 = vpop.eup %2639 }
0x1964   :  { %1926 = vrot.lane.b32.xlu0 %v2640_v42, %s2769_s25  ;;  %s2737_s25 = scalar_lea.vmem %s2066_s27, 128 }
0x1965   :  { %p2738_p4 = scmp.ne.s32.totalorder %s2066_s27, %s2737_s25  ;;  %p2743_p6 = scmp.lt.s32.totalorder %s2737_s25, %s2737_s25 }
0x1967   :  { %p2744_p7 = por %p2743_p6, %p2742_p5 }
0x1969   :  { %p2745_p8 = pnand %p2744_p7, %p2738_p4 }
0x19d6   :  { %v1927_v8 = vpop.permute.xlu0 %1926 }
0x19d7   :  { %v1929_v10 = vmul.f32 %v1927_v8, %v1912_v58 }
0x19d9   :  { %v1930_v24 = vsel %vm1808_vm0, %v1929_v10, %v1733_v50 }
0x19da   :  { %v1935_v41 = vpack.c.bf16 %v1930_v24, %v1930_v24 }
0x19dc   :  { %1941 = vrot.lane.b32.xlu1 %v1935_v41, %s2776_s11 }
0x1a4e   :  { %v1942_v23 = vpop.permute.xlu1 %1941 }
0x1a4f   :  { %2463 = vmatmul.mubr.msk.bf16.vlgmr.msra.gmra.mrb[52].mxu1 %vm331_vm15, %v1942_v23 }
0x1b22   :  { %v1992_v12 = vpop.f32.mrb[52].mxu1 }
0x1b23   :  { %v2045_v22 = vadd.f32 %v2044_v48, %v1992_v12  ;;  %v2464_v18 = vpop.f32.mrb[53].mxu1 }
0x1b24   :  { %v1995_v21 = vpop.f32.mrb[54].mxu1 }
0x1b25   :  { %v2057_v26 = vadd.f32 %v2143_v1, %v2045_v22  ;;  %v2465_v29 = vpop.f32.mrb[55].mxu1 }
0x1b27   :  { %2058 = vst [vmem:[#allocation11] sm:$0xff] %v2057_v26 }
0x1b28   :  { %2748 = shalt.err (!%p2745_p8)
}
0x1b29   :  { %s2749_s9 = scalar_lea.hbm %s3623_s10, 128 }
0x1b2a   :  { %p2750_p9 = scmp.ne.s32.totalorder %s3623_s10, %s2749_s9  ;;  %p2753_p10 = scmp.lt.u32.totalorder %s2749_s9, %s3623_s10 }
0x1b2c   :  { %p2755_p11 = pnand %p2753_p10, %p2750_p9 }
0x1b2e   :  { %2758 = shalt.err (!%p2755_p11)
}
0x1b2f   :  { %2068 = dma.vmem_to_hbm [thread:$0]  %s2066_s27, 128, %s3623_s10, [#allocation5]  }
0x1b30   :  { %2765 = dma.done.wait [#allocation5], 128  }
0x1b31   :  { %2766 = vsyncadd [#allocation5], 4294967168 }
0x1b32   :  { %2072 = vsyncpa [#allocation4], 1 }
0x1b33   :  { %2073 = vsyncpa [#allocation7], 1 }
0x1b34   :  { %2074 = vsyncpa [#allocation10], 1 }
0x1b35   :  { %2075 = vsyncpa [#allocation5], 1 }

</bundles_post_ra>
